<compile_context>
chip_gen: v7x
topology: tpu7x:2x2x1
jax: 0.10.0
libtpu: 0.0.40
codegen_flags: <defaults>
</compile_context>

<pallas_src>
import math
from functools import partial

import jax
import jax.numpy as jnp
from jax.experimental import pallas as pl
from jax.experimental.pallas import tpu as pltpu


# ------------------------- tile-size selection ------------------------------

def _pick_tile(dim, target, align):
    """Largest multiple of `align` that divides `dim` and is <= `target`.
    Falls back to the full dimension (always a legal block size)."""
    if dim <= target:
        return dim
    t = (min(dim, target) // align) * align
    while t >= align:
        if dim % t == 0:
            return t
        t -= align
    return dim


# --------------------- fused (LayerNorm) + matmul kernel ---------------------

def _fused_matmul_kernel(*refs, ln, act, has_res, eps):
    # refs: x, w, b, [gamma, beta], [residual], out, acc
    idx = 0
    x_ref = refs[idx]; idx += 1
    w_ref = refs[idx]; idx += 1
    b_ref = refs[idx]; idx += 1
    if ln:
        g_ref = refs[idx]; idx += 1
        beta_ref = refs[idx]; idx += 1
    if has_res:
        res_ref = refs[idx]; idx += 1
    o_ref = refs[idx]; idx += 1
    acc_ref = refs[idx]

    k_id = pl.program_id(2)

    @pl.when(k_id == 0)
    def _():
        acc_ref[...] = jnp.zeros_like(acc_ref)

    x = x_ref[...].astype(jnp.float32)
    if ln:
        # LayerNorm fused in-register (requires full K in the block).
        mean = jnp.mean(x, axis=-1, keepdims=True)
        var = jnp.mean(jnp.square(x - mean), axis=-1, keepdims=True)
        x = (x - mean) * jax.lax.rsqrt(var + eps)
        x = x * g_ref[...].astype(jnp.float32) + beta_ref[...].astype(jnp.float32)

    acc_ref[...] += jnp.dot(x.astype(jnp.bfloat16), w_ref[...],
                            preferred_element_type=jnp.float32)

    @pl.when(k_id == pl.num_programs(2) - 1)
    def _():
        y = acc_ref[...] + b_ref[...].astype(jnp.float32)
        if act == "gelu":
            # TODO(synk): torch nn.GELU default is exact erf; using the tanh
            # approximation (erf lowering in Mosaic is not guaranteed).
            y = jax.nn.gelu(y)
        if has_res:
            y = y + res_ref[...].astype(jnp.float32)
        o_ref[...] = y.astype(o_ref.dtype)


def fused_matmul(x, w, b, *, gamma=None, beta=None, residual=None,
                 act="none", out_dtype=None, eps=1e-5,
                 tm=256, tn=512, tk=512):
    """out = [LayerNorm](x) @ w + b  [-> gelu]  [+ residual]

    x: (M, K) bf16/f32, w: (K, N) bf16, b/(gamma/beta): (N,)/(K,) f32.
    Tiled over (M, N, K) with a float32 VMEM accumulator.  When a LayerNorm
    is fused, K is kept un-tiled (the norm needs the whole row)."""
    M, K = x.shape
    N = w.shape[1]
    ln = gamma is not None
    has_res = residual is not None
    out_dtype = out_dtype or x.dtype

    tm = _pick_tile(M, tm, 8)
    tn = _pick_tile(N, tn, 128)
    tk = K if ln else _pick_tile(K, tk, 128)
    grid = (M // tm, N // tn, K // tk)

    in_specs = [
        pl.BlockSpec((tm, tk), lambda i, j, k: (i, k)),
        pl.BlockSpec((tk, tn), lambda i, j, k: (k, j)),
        pl.BlockSpec((1, tn), lambda i, j, k: (0, j)),
    ]
    operands = [x, w, b.reshape(1, N)]
    if ln:
        in_specs += [pl.BlockSpec((1, tk), lambda i, j, k: (0, k)),
                     pl.BlockSpec((1, tk), lambda i, j, k: (0, k))]
        operands += [gamma.reshape(1, K), beta.reshape(1, K)]
    if has_res:
        in_specs.append(pl.BlockSpec((tm, tn), lambda i, j, k: (i, j)))
        operands.append(residual)

    return pl.pallas_call(
        partial(_fused_matmul_kernel, ln=ln, act=act, has_res=has_res, eps=eps),
        out_shape=jax.ShapeDtypeStruct((M, N), out_dtype),
        grid=grid,
        in_specs=in_specs,
        out_specs=pl.BlockSpec((tm, tn), lambda i, j, k: (i, j)),
        scratch_shapes=[pltpu.VMEM((tm, tn), jnp.float32)],
        compiler_params=pltpu.CompilerParams(
            dimension_semantics=("parallel", "parallel", "arbitrary")),
    )(*operands)


# ----------------- fused rotary + causal attention kernel --------------------

def _attn_kernel(qkv_ref, cos_ref, sin_ref, o_ref, *, num_heads, scale):
    # qkv_ref: (1, L, 3D), cos/sin: (L, Dh), o_ref: (1, L, D).
    # All heads of one batch element handled in this grid step so the output
    # block is lane-dense (last dim = D).
    L = qkv_ref.shape[1]
    D = qkv_ref.shape[2] // 3
    Dh = D // num_heads
    half = Dh // 2

    qkv = qkv_ref[0]                                   # (L, 3D) bf16
    cos = cos_ref[...]                                 # (L, Dh)  f32
    sin = sin_ref[...]

    row = jax.lax.broadcasted_iota(jnp.int32, (L, L), 0)
    col = jax.lax.broadcasted_iota(jnp.int32, (L, L), 1)
    causal = col <= row

    def rot_half(t):                                   # split-halves rotary
        return jnp.concatenate([-t[:, half:], t[:, :half]], axis=-1)

    outs = []
    for h in range(num_heads):                         # static unroll (small H)
        q = qkv[:, h * Dh:(h + 1) * Dh].astype(jnp.float32)
        k = qkv[:, D + h * Dh:D + (h + 1) * Dh].astype(jnp.float32)
        v = qkv[:, 2 * D + h * Dh:2 * D + (h + 1) * Dh]

        q = q * cos + rot_half(q) * sin
        k = k * cos + rot_half(k) * sin
        q = q * scale                                  # fold 1/sqrt(Dh) into q

        s = jax.lax.dot_general(                       # (L, L), no explicit k.T
            q.astype(jnp.bfloat16), k.astype(jnp.bfloat16),
            dimension_numbers=(((1,), (1,)), ((), ())),
            preferred_element_type=jnp.float32)
        s = jnp.where(causal, s, -1e30)                # causal mask (f32)
        m = jnp.max(s, axis=-1, keepdims=True)
        p = jnp.exp(s - m)
        denom = jnp.sum(p, axis=-1, keepdims=True)
        o = jnp.dot(p.astype(v.dtype), v, preferred_element_type=jnp.float32)
        o = o * pl.reciprocal(denom, approx=True)      # EUP vrcp
        outs.append(o)

    o_ref[0] = jnp.concatenate(outs, axis=-1).astype(o_ref.dtype)


def causal_rotary_attention(qkv, cos, sin, num_heads):
    """qkv: (B, L, 3D) -> (B, L, D); rotary + causal softmax attention."""
    # TODO(synk): for long L switch to a flash-style KV-tiled online softmax
    # (second grid axis + m/l/acc scratch) to bound the (L, L) score tile.
    B, L, D3 = qkv.shape
    D = D3 // 3
    Dh = D // num_heads
    scale = 1.0 / math.sqrt(Dh)
    return pl.pallas_call(
        partial(_attn_kernel, num_heads=num_heads, scale=scale),
        out_shape=jax.ShapeDtypeStruct((B, L, D), qkv.dtype),
        grid=(B,),
        in_specs=[
            pl.BlockSpec((1, L, D3), lambda b: (b, 0, 0)),
            pl.BlockSpec((L, Dh), lambda b: (0, 0)),
            pl.BlockSpec((L, Dh), lambda b: (0, 0)),
        ],
        out_specs=pl.BlockSpec((1, L, D), lambda b: (b, 0, 0)),
        compiler_params=pltpu.CompilerParams(dimension_semantics=("parallel",)),
    )(qkv, cos, sin)


# ------------------------------ JAX glue ------------------------------------

def precompute_rotary(dim, end, theta):
    inv = 1.0 / (theta ** (jnp.arange(0, dim, 2, dtype=jnp.float32) / dim))
    t = jnp.arange(end, dtype=jnp.float32)
    freqs = jnp.outer(t, inv)                           # (end, dim//2)
    # Duplicated (split-halves) layout for the in-kernel rotate_half rotary;
    # q/k projection columns are permuted to match (see init_params).
    cos = jnp.concatenate([jnp.cos(freqs), jnp.cos(freqs)], axis=-1)
    sin = jnp.concatenate([jnp.sin(freqs), jnp.sin(freqs)], axis=-1)
    return cos, sin


def _interleaved_to_half_perm(D, num_heads):
    Dh = D // num_heads
    head_perm = jnp.concatenate([jnp.arange(0, Dh, 2), jnp.arange(1, Dh, 2)])
    return jnp.concatenate([head_perm + h * Dh for h in range(num_heads)])


def decoder_block(x, p, cos, sin, num_heads):
    B, L, D = x.shape
    xf = x.reshape(B * L, D)

    # --- attention branch: fused LN1 + QKV projection, in-kernel rotary ---
    qkv = fused_matmul(xf, p["wqkv"], p["bqkv"],
                       gamma=p["norm1_g"], beta=p["norm1_b"])
    heads = causal_rotary_attention(qkv.reshape(B, L, 3 * D), cos, sin,
                                    num_heads)
    # output projection with fused bias + residual add
    xf = fused_matmul(heads.reshape(B * L, D), p["wo"], p["bo"], residual=xf)

    # --- feed-forward branch (Linear -> GELU -> Linear, dropout = identity) ---
    # TODO(synk): FeedFowardBlock source not provided; assuming Linear->GELU->Linear.
    h = fused_matmul(xf, p["w1"], p["b1"],
                     gamma=p["norm2_g"], beta=p["norm2_b"], act="gelu")
    xf = fused_matmul(h, p["w2"], p["b2"], residual=xf)
    return xf.reshape(B, L, D)


def decoder_lm_forward(params, tokens, cfg):
    B, L = tokens.shape
    D = cfg["embed_dim"]
    cos, sin = params["rotary"]
    cos, sin = cos[:L], sin[:L]

    x = params["embedding"][tokens]                    # embedding gather (glue)
    for layer_p in params["layers"]:
        x = decoder_block(x, layer_p, cos, sin, cfg["num_heads"])

    # final output LayerNorm fused into the lm_head matmul
    logits = fused_matmul(x.reshape(B * L, D),
                          params["lm_head_w"], params["lm_head_b"],
                          gamma=params["out_norm_g"], beta=params["out_norm_b"],
                          out_dtype=jnp.float32)
    return logits.reshape(B, L, cfg["vocab_size"])


# ---------------------------- parameter init ---------------------------------

def init_params(key, cfg):
    V, D, Hd, nl, H = (cfg["vocab_size"], cfg["embed_dim"], cfg["hidden_size"],
                       cfg["num_layers"], cfg["num_heads"])
    Dh = D // H

    def nrm(k, shape, scale=0.02):
        return scale * jax.random.normal(k, shape, dtype=jnp.float32)

    keys = jax.random.split(key, 2 + nl)
    params = {
        "embedding": nrm(keys[0], (V, D)).astype(jnp.bfloat16),
        "out_norm_g": jnp.ones((D,), jnp.float32),
        "out_norm_b": jnp.zeros((D,), jnp.float32),
        "lm_head_w": nrm(keys[1], (D, V)).astype(jnp.bfloat16),
        "lm_head_b": jnp.zeros((V,), jnp.float32),
        "rotary": precompute_rotary(Dh, cfg["max_seq_len"],
                                    cfg["rotary_theta"]),
        "layers": [],
    }
    # Per-head column permutation: interleaved (x0,x1) rotary pairs ->
    # split-halves (evens | odds).  Applied identically to wq and wk, so the
    # in-kernel rotate_half rotary reproduces the interleaved/complex
    # convention's attention scores exactly.
    perm = _interleaved_to_half_perm(D, H)
    for li in range(nl):
        lk = jax.random.split(keys[2 + li], 6)
        wq, wk, wv, wo = (nrm(lk[0], (D, D)), nrm(lk[1], (D, D)),
                          nrm(lk[2], (D, D)), nrm(lk[3], (D, D)))
        bq = bk = bv = jnp.zeros((D,), jnp.float32)
        wq, bq = wq[:, perm], bq[perm]
        wk, bk = wk[:, perm], bk[perm]
        params["layers"].append({
            "norm1_g": jnp.ones((D,), jnp.float32),
            "norm1_b": jnp.zeros((D,), jnp.float32),
            "wqkv": jnp.concatenate([wq, wk, wv], axis=1).astype(jnp.bfloat16),
            "bqkv": jnp.concatenate([bq, bk, bv]),
            "wo": wo.astype(jnp.bfloat16),
            "bo": jnp.zeros((D,), jnp.float32),
            "norm2_g": jnp.ones((D,), jnp.float32),
            "norm2_b": jnp.zeros((D,), jnp.float32),
            "w1": nrm(lk[4], (D, Hd)).astype(jnp.bfloat16),
            "b1": jnp.zeros((Hd,), jnp.float32),
            "w2": nrm(lk[5], (Hd, D)).astype(jnp.bfloat16),
            "b2": jnp.zeros((D,), jnp.float32),
        })
    return params


# --------------------------------- main ---------------------------------------

if __name__ == "__main__":
    cfg = dict(vocab_size=256, num_layers=2, embed_dim=128, hidden_size=256,
               num_heads=4, max_seq_len=64, rotary_theta=10000)
    B, L = 2, 16

    key = jax.random.PRNGKey(0)
    pkey, tkey = jax.random.split(key)
    params = init_params(pkey, cfg)
    tokens = jax.random.randint(tkey, (B, L), 0, cfg["vocab_size"],
                                dtype=jnp.int32)

    fwd = jax.jit(partial(decoder_lm_forward, cfg=cfg))
    logits = fwd(params, tokens)
    logits = jax.block_until_ready(logits)
    assert logits.shape == (B, L, cfg["vocab_size"])
    assert bool(jnp.all(jnp.isfinite(logits)))
    print("KERNEL_OK")
</pallas_src>

<mosaic_0001>
module attributes {stable_mosaic.version = 11 : i64} {
  func.func @_fused_matmul_kernel(%arg0: i32, %arg1: i32, %arg2: i32, %arg3: memref<32x128xbf16, #tpu.memory_space<vmem>>, %arg4: memref<128x128xbf16, #tpu.memory_space<vmem>>, %arg5: memref<1x128xf32, #tpu.memory_space<vmem>>, %arg6: memref<32x128xbf16, #tpu.memory_space<vmem>>, %arg7: memref<32x128xbf16, #tpu.memory_space<vmem>>, %arg8: memref<32x128xf32, #tpu.memory_space<vmem>>) attributes {dimension_semantics = [#tpu.dimension_semantics<parallel>, #tpu.dimension_semantics<parallel>, #tpu.dimension_semantics<arbitrary>], iteration_bounds = array<i64: 1, 1, 1>, scalar_prefetch = 0 : i64, scratch_operands = 1 : i64, tpu.core_type = #tpu.core_type<tc>, window_params = [{transform_indices = @transform_0, window_bounds = array<i64: 32, 128>}, {transform_indices = @transform_1, window_bounds = array<i64: 128, 128>}, {transform_indices = @transform_2, window_bounds = array<i64: 1, 128>}, {transform_indices = @transform_3, window_bounds = array<i64: 32, 128>}, {transform_indices = @transform_4, window_bounds = array<i64: 32, 128>}]} {
    %c0_i32 = arith.constant 0 : i32
    %0 = arith.cmpi eq, %arg2, %c0_i32 : i32
    %1 = arith.extui %0 : i1 to i32
    %c0_i32_0 = arith.constant 0 : i32
    %2 = arith.cmpi ne, %1, %c0_i32_0 : i32
    scf.if %2 {
      %cst_10 = arith.constant 0.000000e+00 : f32
      %14 = vector.broadcast %cst_10 : f32 to vector<32x128xf32>
      %c0_11 = arith.constant 0 : index
      %c0_12 = arith.constant 0 : index
      %15 = vector.load %arg8[%c0_11, %c0_12] : memref<32x128xf32, #tpu.memory_space<vmem>>, vector<32x128xf32>
      tpu.vector_store %arg8[%c0_11, %c0_12], %14 {strides = array<i32>} : memref<32x128xf32, #tpu.memory_space<vmem>>, vector<32x128xf32>,
    } else {
    }
    %c0 = arith.constant 0 : index
    %c0_1 = arith.constant 0 : index
    %3 = vector.load %arg3[%c0, %c0_1] : memref<32x128xbf16, #tpu.memory_space<vmem>>, vector<32x128xbf16>
    %4 = arith.extf %3 : vector<32x128xbf16> to vector<32x128xf32>
    %c0_2 = arith.constant 0 : index
    %c0_3 = arith.constant 0 : index
    %5 = vector.load %arg8[%c0_2, %c0_3] : memref<32x128xf32, #tpu.memory_space<vmem>>, vector<32x128xf32>
    %6 = arith.truncf %4 : vector<32x128xf32> to vector<32x128xbf16>
    %c0_4 = arith.constant 0 : index
    %c0_5 = arith.constant 0 : index
    %7 = vector.load %arg4[%c0_4, %c0_5] : memref<128x128xbf16, #tpu.memory_space<vmem>>, vector<128x128xbf16>
    %cst = arith.constant dense<0.000000e+00> : vector<32x128xf32>
    %8 = tpu.matmul %6, %7, %cst {dimension_numbers = #tpu.dot_dimension_numbers<[1], [0], [0], [1], [0, 0, 1, 1], [], []>} : vector<32x128xbf16>, vector<128x128xbf16>, vector<32x128xf32> -> vector<32x128xf32>
    %9 = arith.addf %5, %8 : vector<32x128xf32>
    %c0_6 = arith.constant 0 : index
    %c0_7 = arith.constant 0 : index
    %10 = vector.load %arg8[%c0_6, %c0_7] : memref<32x128xf32, #tpu.memory_space<vmem>>, vector<32x128xf32>
    tpu.vector_store %arg8[%c0_6, %c0_7], %9 {strides = array<i32>} : memref<32x128xf32, #tpu.memory_space<vmem>>, vector<32x128xf32>,
    %c0_i32_8 = arith.constant 0 : i32
    %11 = arith.cmpi eq, %arg2, %c0_i32_8 : i32
    %12 = arith.extui %11 : i1 to i32
    %c0_i32_9 = arith.constant 0 : i32
    %13 = arith.cmpi ne, %12, %c0_i32_9 : i32
    scf.if %13 {
      %c0_10 = arith.constant 0 : index
      %c0_11 = arith.constant 0 : index
      %14 = vector.load %arg8[%c0_10, %c0_11] : memref<32x128xf32, #tpu.memory_space<vmem>>, vector<32x128xf32>
      %c0_12 = arith.constant 0 : index
      %c0_13 = arith.constant 0 : index
      %15 = vector.load %arg5[%c0_12, %c0_13] : memref<1x128xf32, #tpu.memory_space<vmem>>, vector<1x128xf32>
      %16 = vector.broadcast %15 : vector<1x128xf32> to vector<32x128xf32>
      %17 = arith.addf %14, %16 : vector<32x128xf32>
      %c0_14 = arith.constant 0 : index
      %c0_15 = arith.constant 0 : index
      %18 = vector.load %arg6[%c0_14, %c0_15] : memref<32x128xbf16, #tpu.memory_space<vmem>>, vector<32x128xbf16>
      %19 = arith.extf %18 : vector<32x128xbf16> to vector<32x128xf32>
      %20 = arith.addf %17, %19 : vector<32x128xf32>
      %21 = arith.truncf %20 : vector<32x128xf32> to vector<32x128xbf16>
      %c0_16 = arith.constant 0 : index
      %c0_17 = arith.constant 0 : index
      %22 = vector.load %arg7[%c0_16, %c0_17] : memref<32x128xbf16, #tpu.memory_space<vmem>>, vector<32x128xbf16>
      tpu.vector_store %arg7[%c0_16, %c0_17], %21 {strides = array<i32>} : memref<32x128xbf16, #tpu.memory_space<vmem>>, vector<32x128xbf16>,
    } else {
    }
    return
  }
  func.func @transform_0(%arg0: i32, %arg1: i32, %arg2: i32) -> (i32, i32) {
    %c0_i32 = arith.constant 0 : i32
    return %arg0, %arg2 : i32, i32
  }
  func.func @transform_1(%arg0: i32, %arg1: i32, %arg2: i32) -> (i32, i32) {
    %c0_i32 = arith.constant 0 : i32
    return %arg2, %arg1 : i32, i32
  }
  func.func @transform_2(%arg0: i32, %arg1: i32, %arg2: i32) -> (i32, i32) {
    %c0_i32 = arith.constant 0 : i32
    %c0_i32_0 = arith.constant 0 : i32
    return %c0_i32, %arg1 : i32, i32
  }
  func.func @transform_3(%arg0: i32, %arg1: i32, %arg2: i32) -> (i32, i32) {
    %c0_i32 = arith.constant 0 : i32
    return %arg0, %arg1 : i32, i32
  }
  func.func @transform_4(%arg0: i32, %arg1: i32, %arg2: i32) -> (i32, i32) {
    %c0_i32 = arith.constant 0 : i32
    return %arg0, %arg1 : i32, i32
  }
}

module attributes {stable_mosaic.version = 11 : i64} {
  func.func @_fused_matmul_kernel(%arg0: i32, %arg1: i32, %arg2: i32, %arg3: memref<32x128xbf16, #tpu.memory_space<vmem>>, %arg4: memref<128x384xbf16, #tpu.memory_space<vmem>>, %arg5: memref<1x384xf32, #tpu.memory_space<vmem>>, %arg6: memref<1x128xf32, #tpu.memory_space<vmem>>, %arg7: memref<1x128xf32, #tpu.memory_space<vmem>>, %arg8: memref<32x384xbf16, #tpu.memory_space<vmem>>, %arg9: memref<32x384xf32, #tpu.memory_space<vmem>>) attributes {dimension_semantics = [#tpu.dimension_semantics<parallel>, #tpu.dimension_semantics<parallel>, #tpu.dimension_semantics<arbitrary>], iteration_bounds = array<i64: 1, 1, 1>, scalar_prefetch = 0 : i64, scratch_operands = 1 : i64, tpu.core_type = #tpu.core_type<tc>, window_params = [{transform_indices = @transform_0, window_bounds = array<i64: 32, 128>}, {transform_indices = @transform_1, window_bounds = array<i64: 128, 384>}, {transform_indices = @transform_2, window_bounds = array<i64: 1, 384>}, {transform_indices = @transform_3, window_bounds = array<i64: 1, 128>}, {transform_indices = @transform_4, window_bounds = array<i64: 1, 128>}, {transform_indices = @transform_5, window_bounds = array<i64: 32, 384>}]} {
    %c0_i32 = arith.constant 0 : i32
    %0 = arith.cmpi eq, %arg2, %c0_i32 : i32
    %1 = arith.extui %0 : i1 to i32
    %c0_i32_0 = arith.constant 0 : i32
    %2 = arith.cmpi ne, %1, %c0_i32_0 : i32
    scf.if %2 {
      %cst_19 = arith.constant 0.000000e+00 : f32
      %38 = vector.broadcast %cst_19 : f32 to vector<32x384xf32>
      %c0_20 = arith.constant 0 : index
      %c0_21 = arith.constant 0 : index
      %39 = vector.load %arg9[%c0_20, %c0_21] : memref<32x384xf32, #tpu.memory_space<vmem>>, vector<32x384xf32>
      tpu.vector_store %arg9[%c0_20, %c0_21], %38 {strides = array<i32>} : memref<32x384xf32, #tpu.memory_space<vmem>>, vector<32x384xf32>,
    } else {
    }
    %c0 = arith.constant 0 : index
    %c0_1 = arith.constant 0 : index
    %3 = vector.load %arg3[%c0, %c0_1] : memref<32x128xbf16, #tpu.memory_space<vmem>>, vector<32x128xbf16>
    %4 = arith.extf %3 : vector<32x128xbf16> to vector<32x128xf32>
    %cst = arith.constant dense<0.000000e+00> : vector<32xf32>
    %5 = vector.multi_reduction <add>, %4, %cst [1] : vector<32x128xf32> to vector<32xf32>
    %6 = vector.shape_cast %5 : vector<32xf32> to vector<32x1xf32>
    %cst_2 = arith.constant 1.280000e+02 : f32
    %7 = vector.broadcast %cst_2 : f32 to vector<32x1xf32>
    %8 = arith.divf %6, %7 : vector<32x1xf32>
    %9 = vector.broadcast %8 : vector<32x1xf32> to vector<32x128xf32>
    %10 = arith.subf %4, %9 : vector<32x128xf32>
    %11 = arith.mulf %10, %10 : vector<32x128xf32>
    %cst_3 = arith.constant dense<0.000000e+00> : vector<32xf32>
    %12 = vector.multi_reduction <add>, %11, %cst_3 [1] : vector<32x128xf32> to vector<32xf32>
    %13 = vector.shape_cast %12 : vector<32xf32> to vector<32x1xf32>
    %cst_4 = arith.constant 1.280000e+02 : f32
    %14 = vector.broadcast %cst_4 : f32 to vector<32x1xf32>
    %15 = arith.divf %13, %14 : vector<32x1xf32>
    %16 = vector.broadcast %8 : vector<32x1xf32> to vector<32x128xf32>
    %17 = arith.subf %4, %16 : vector<32x128xf32>
    %cst_5 = arith.constant 9.99999974E-6 : f32
    %18 = vector.broadcast %cst_5 : f32 to vector<32x1xf32>
    %19 = arith.addf %15, %18 : vector<32x1xf32>
    %20 = math.rsqrt %19 : vector<32x1xf32>
    %21 = vector.broadcast %20 : vector<32x1xf32> to vector<32x128xf32>
    %22 = arith.mulf %17, %21 : vector<32x128xf32>
    %c0_6 = arith.constant 0 : index
    %c0_7 = arith.constant 0 : index
    %23 = vector.load %arg6[%c0_6, %c0_7] : memref<1x128xf32, #tpu.memory_space<vmem>>, vector<1x128xf32>
    %24 = vector.broadcast %23 : vector<1x128xf32> to vector<32x128xf32>
    %25 = arith.mulf %22, %24 : vector<32x128xf32>
    %c0_8 = arith.constant 0 : index
    %c0_9 = arith.constant 0 : index
    %26 = vector.load %arg7[%c0_8, %c0_9] : memref<1x128xf32, #tpu.memory_space<vmem>>, vector<1x128xf32>
    %27 = vector.broadcast %26 : vector<1x128xf32> to vector<32x128xf32>
    %28 = arith.addf %25, %27 : vector<32x128xf32>
    %c0_10 = arith.constant 0 : index
    %c0_11 = arith.constant 0 : index
    %29 = vector.load %arg9[%c0_10, %c0_11] : memref<32x384xf32, #tpu.memory_space<vmem>>, vector<32x384xf32>
    %30 = arith.truncf %28 : vector<32x128xf32> to vector<32x128xbf16>
    %c0_12 = arith.constant 0 : index
    %c0_13 = arith.constant 0 : index
    %31 = vector.load %arg4[%c0_12, %c0_13] : memref<128x384xbf16, #tpu.memory_space<vmem>>, vector<128x384xbf16>
    %cst_14 = arith.constant dense<0.000000e+00> : vector<32x384xf32>
    %32 = tpu.matmul %30, %31, %cst_14 {dimension_numbers = #tpu.dot_dimension_numbers<[1], [0], [0], [1], [0, 0, 1, 1], [], []>} : vector<32x128xbf16>, vector<128x384xbf16>, vector<32x384xf32> -> vector<32x384xf32>
    %33 = arith.addf %29, %32 : vector<32x384xf32>
    %c0_15 = arith.constant 0 : index
    %c0_16 = arith.constant 0 : index
    %34 = vector.load %arg9[%c0_15, %c0_16] : memref<32x384xf32, #tpu.memory_space<vmem>>, vector<32x384xf32>
    tpu.vector_store %arg9[%c0_15, %c0_16], %33 {strides = array<i32>} : memref<32x384xf32, #tpu.memory_space<vmem>>, vector<32x384xf32>,
    %c0_i32_17 = arith.constant 0 : i32
    %35 = arith.cmpi eq, %arg2, %c0_i32_17 : i32
    %36 = arith.extui %35 : i1 to i32
    %c0_i32_18 = arith.constant 0 : i32
    %37 = arith.cmpi ne, %36, %c0_i32_18 : i32
    scf.if %37 {
      %c0_19 = arith.constant 0 : index
      %c0_20 = arith.constant 0 : index
      %38 = vector.load %arg9[%c0_19, %c0_20] : memref<32x384xf32, #tpu.memory_space<vmem>>, vector<32x384xf32>
      %c0_21 = arith.constant 0 : index
      %c0_22 = arith.constant 0 : index
      %39 = vector.load %arg5[%c0_21, %c0_22] : memref<1x384xf32, #tpu.memory_space<vmem>>, vector<1x384xf32>
      %40 = vector.broadcast %39 : vector<1x384xf32> to vector<32x384xf32>
      %41 = arith.addf %38, %40 : vector<32x384xf32>
      %42 = arith.truncf %41 : vector<32x384xf32> to vector<32x384xbf16>
      %c0_23 = arith.constant 0 : index
      %c0_24 = arith.constant 0 : index
      %43 = vector.load %arg8[%c0_23, %c0_24] : memref<32x384xbf16, #tpu.memory_space<vmem>>, vector<32x384xbf16>
      tpu.vector_store %arg8[%c0_23, %c0_24], %42 {strides = array<i32>} : memref<32x384xbf16, #tpu.memory_space<vmem>>, vector<32x384xbf16>,
    } else {
    }
    return
  }
  func.func @transform_0(%arg0: i32, %arg1: i32, %arg2: i32) -> (i32, i32) {
    %c0_i32 = arith.constant 0 : i32
    return %arg0, %arg2 : i32, i32
  }
  func.func @transform_1(%arg0: i32, %arg1: i32, %arg2: i32) -> (i32, i32) {
    %c0_i32 = arith.constant 0 : i32
    return %arg2, %arg1 : i32, i32
  }
  func.func @transform_2(%arg0: i32, %arg1: i32, %arg2: i32) -> (i32, i32) {
    %c0_i32 = arith.constant 0 : i32
    %c0_i32_0 = arith.constant 0 : i32
    return %c0_i32, %arg1 : i32, i32
  }
  func.func @transform_3(%arg0: i32, %arg1: i32, %arg2: i32) -> (i32, i32) {
    %c0_i32 = arith.constant 0 : i32
    %c0_i32_0 = arith.constant 0 : i32
    return %c0_i32, %arg2 : i32, i32
  }
  func.func @transform_4(%arg0: i32, %arg1: i32, %arg2: i32) -> (i32, i32) {
    %c0_i32 = arith.constant 0 : i32
    %c0_i32_0 = arith.constant 0 : i32
    return %c0_i32, %arg2 : i32, i32
  }
  func.func @transform_5(%arg0: i32, %arg1: i32, %arg2: i32) -> (i32, i32) {
    %c0_i32 = arith.constant 0 : i32
    return %arg0, %arg1 : i32, i32
  }
}

module attributes {stable_mosaic.version = 11 : i64} {
  func.func @_fused_matmul_kernel(%arg0: i32, %arg1: i32, %arg2: i32, %arg3: memref<32x128xbf16, #tpu.memory_space<vmem>>, %arg4: memref<128x256xbf16, #tpu.memory_space<vmem>>, %arg5: memref<1x256xf32, #tpu.memory_space<vmem>>, %arg6: memref<1x128xf32, #tpu.memory_space<vmem>>, %arg7: memref<1x128xf32, #tpu.memory_space<vmem>>, %arg8: memref<32x256xbf16, #tpu.memory_space<vmem>>, %arg9: memref<32x256xf32, #tpu.memory_space<vmem>>) attributes {dimension_semantics = [#tpu.dimension_semantics<parallel>, #tpu.dimension_semantics<parallel>, #tpu.dimension_semantics<arbitrary>], iteration_bounds = array<i64: 1, 1, 1>, scalar_prefetch = 0 : i64, scratch_operands = 1 : i64, tpu.core_type = #tpu.core_type<tc>, window_params = [{transform_indices = @transform_0, window_bounds = array<i64: 32, 128>}, {transform_indices = @transform_1, window_bounds = array<i64: 128, 256>}, {transform_indices = @transform_2, window_bounds = array<i64: 1, 256>}, {transform_indices = @transform_3, window_bounds = array<i64: 1, 128>}, {transform_indices = @transform_4, window_bounds = array<i64: 1, 128>}, {transform_indices = @transform_5, window_bounds = array<i64: 32, 256>}]} {
    %c0_i32 = arith.constant 0 : i32
    %0 = arith.cmpi eq, %arg2, %c0_i32 : i32
    %1 = arith.extui %0 : i1 to i32
    %c0_i32_0 = arith.constant 0 : i32
    %2 = arith.cmpi ne, %1, %c0_i32_0 : i32
    scf.if %2 {
      %cst_19 = arith.constant 0.000000e+00 : f32
      %38 = vector.broadcast %cst_19 : f32 to vector<32x256xf32>
      %c0_20 = arith.constant 0 : index
      %c0_21 = arith.constant 0 : index
      %39 = vector.load %arg9[%c0_20, %c0_21] : memref<32x256xf32, #tpu.memory_space<vmem>>, vector<32x256xf32>
      tpu.vector_store %arg9[%c0_20, %c0_21], %38 {strides = array<i32>} : memref<32x256xf32, #tpu.memory_space<vmem>>, vector<32x256xf32>,
    } else {
    }
    %c0 = arith.constant 0 : index
    %c0_1 = arith.constant 0 : index
    %3 = vector.load %arg3[%c0, %c0_1] : memref<32x128xbf16, #tpu.memory_space<vmem>>, vector<32x128xbf16>
    %4 = arith.extf %3 : vector<32x128xbf16> to vector<32x128xf32>
    %cst = arith.constant dense<0.000000e+00> : vector<32xf32>
    %5 = vector.multi_reduction <add>, %4, %cst [1] : vector<32x128xf32> to vector<32xf32>
    %6 = vector.shape_cast %5 : vector<32xf32> to vector<32x1xf32>
    %cst_2 = arith.constant 1.280000e+02 : f32
    %7 = vector.broadcast %cst_2 : f32 to vector<32x1xf32>
    %8 = arith.divf %6, %7 : vector<32x1xf32>
    %9 = vector.broadcast %8 : vector<32x1xf32> to vector<32x128xf32>
    %10 = arith.subf %4, %9 : vector<32x128xf32>
    %11 = arith.mulf %10, %10 : vector<32x128xf32>
    %cst_3 = arith.constant dense<0.000000e+00> : vector<32xf32>
    %12 = vector.multi_reduction <add>, %11, %cst_3 [1] : vector<32x128xf32> to vector<32xf32>
    %13 = vector.shape_cast %12 : vector<32xf32> to vector<32x1xf32>
    %cst_4 = arith.constant 1.280000e+02 : f32
    %14 = vector.broadcast %cst_4 : f32 to vector<32x1xf32>
    %15 = arith.divf %13, %14 : vector<32x1xf32>
    %16 = vector.broadcast %8 : vector<32x1xf32> to vector<32x128xf32>
    %17 = arith.subf %4, %16 : vector<32x128xf32>
    %cst_5 = arith.constant 9.99999974E-6 : f32
    %18 = vector.broadcast %cst_5 : f32 to vector<32x1xf32>
    %19 = arith.addf %15, %18 : vector<32x1xf32>
    %20 = math.rsqrt %19 : vector<32x1xf32>
    %21 = vector.broadcast %20 : vector<32x1xf32> to vector<32x128xf32>
    %22 = arith.mulf %17, %21 : vector<32x128xf32>
    %c0_6 = arith.constant 0 : index
    %c0_7 = arith.constant 0 : index
    %23 = vector.load %arg6[%c0_6, %c0_7] : memref<1x128xf32, #tpu.memory_space<vmem>>, vector<1x128xf32>
    %24 = vector.broadcast %23 : vector<1x128xf32> to vector<32x128xf32>
    %25 = arith.mulf %22, %24 : vector<32x128xf32>
    %c0_8 = arith.constant 0 : index
    %c0_9 = arith.constant 0 : index
    %26 = vector.load %arg7[%c0_8, %c0_9] : memref<1x128xf32, #tpu.memory_space<vmem>>, vector<1x128xf32>
    %27 = vector.broadcast %26 : vector<1x128xf32> to vector<32x128xf32>
    %28 = arith.addf %25, %27 : vector<32x128xf32>
    %c0_10 = arith.constant 0 : index
    %c0_11 = arith.constant 0 : index
    %29 = vector.load %arg9[%c0_10, %c0_11] : memref<32x256xf32, #tpu.memory_space<vmem>>, vector<32x256xf32>
    %30 = arith.truncf %28 : vector<32x128xf32> to vector<32x128xbf16>
    %c0_12 = arith.constant 0 : index
    %c0_13 = arith.constant 0 : index
    %31 = vector.load %arg4[%c0_12, %c0_13] : memref<128x256xbf16, #tpu.memory_space<vmem>>, vector<128x256xbf16>
    %cst_14 = arith.constant dense<0.000000e+00> : vector<32x256xf32>
    %32 = tpu.matmul %30, %31, %cst_14 {dimension_numbers = #tpu.dot_dimension_numbers<[1], [0], [0], [1], [0, 0, 1, 1], [], []>} : vector<32x128xbf16>, vector<128x256xbf16>, vector<32x256xf32> -> vector<32x256xf32>
    %33 = arith.addf %29, %32 : vector<32x256xf32>
    %c0_15 = arith.constant 0 : index
    %c0_16 = arith.constant 0 : index
    %34 = vector.load %arg9[%c0_15, %c0_16] : memref<32x256xf32, #tpu.memory_space<vmem>>, vector<32x256xf32>
    tpu.vector_store %arg9[%c0_15, %c0_16], %33 {strides = array<i32>} : memref<32x256xf32, #tpu.memory_space<vmem>>, vector<32x256xf32>,
    %c0_i32_17 = arith.constant 0 : i32
    %35 = arith.cmpi eq, %arg2, %c0_i32_17 : i32
    %36 = arith.extui %35 : i1 to i32
    %c0_i32_18 = arith.constant 0 : i32
    %37 = arith.cmpi ne, %36, %c0_i32_18 : i32
    scf.if %37 {
      %c0_19 = arith.constant 0 : index
      %c0_20 = arith.constant 0 : index
      %38 = vector.load %arg9[%c0_19, %c0_20] : memref<32x256xf32, #tpu.memory_space<vmem>>, vector<32x256xf32>
      %c0_21 = arith.constant 0 : index
      %c0_22 = arith.constant 0 : index
      %39 = vector.load %arg5[%c0_21, %c0_22] : memref<1x256xf32, #tpu.memory_space<vmem>>, vector<1x256xf32>
      %40 = vector.broadcast %39 : vector<1x256xf32> to vector<32x256xf32>
      %41 = arith.addf %38, %40 : vector<32x256xf32>
      %42 = arith.mulf %41, %41 : vector<32x256xf32>
      %43 = arith.mulf %41, %42 : vector<32x256xf32>
      %cst_23 = arith.constant 4.471500e-02 : f32
      %44 = vector.broadcast %cst_23 : f32 to vector<32x256xf32>
      %45 = arith.mulf %44, %43 : vector<32x256xf32>
      %46 = arith.addf %41, %45 : vector<32x256xf32>
      %cst_24 = arith.constant 0.797884583 : f32
      %47 = vector.broadcast %cst_24 : f32 to vector<32x256xf32>
      %48 = arith.mulf %47, %46 : vector<32x256xf32>
      %49 = math.tanh %48 : vector<32x256xf32>
      %cst_25 = arith.constant 1.000000e+00 : f32
      %50 = vector.broadcast %cst_25 : f32 to vector<32x256xf32>
      %51 = arith.addf %50, %49 : vector<32x256xf32>
      %cst_26 = arith.constant 5.000000e-01 : f32
      %52 = vector.broadcast %cst_26 : f32 to vector<32x256xf32>
      %53 = arith.mulf %52, %51 : vector<32x256xf32>
      %54 = arith.mulf %41, %53 : vector<32x256xf32>
      %55 = arith.truncf %54 : vector<32x256xf32> to vector<32x256xbf16>
      %c0_27 = arith.constant 0 : index
      %c0_28 = arith.constant 0 : index
      %56 = vector.load %arg8[%c0_27, %c0_28] : memref<32x256xbf16, #tpu.memory_space<vmem>>, vector<32x256xbf16>
      tpu.vector_store %arg8[%c0_27, %c0_28], %55 {strides = array<i32>} : memref<32x256xbf16, #tpu.memory_space<vmem>>, vector<32x256xbf16>,
    } else {
    }
    return
  }
  func.func @transform_0(%arg0: i32, %arg1: i32, %arg2: i32) -> (i32, i32) {
    %c0_i32 = arith.constant 0 : i32
    return %arg0, %arg2 : i32, i32
  }
  func.func @transform_1(%arg0: i32, %arg1: i32, %arg2: i32) -> (i32, i32) {
    %c0_i32 = arith.constant 0 : i32
    return %arg2, %arg1 : i32, i32
  }
  func.func @transform_2(%arg0: i32, %arg1: i32, %arg2: i32) -> (i32, i32) {
    %c0_i32 = arith.constant 0 : i32
    %c0_i32_0 = arith.constant 0 : i32
    return %c0_i32, %arg1 : i32, i32
  }
  func.func @transform_3(%arg0: i32, %arg1: i32, %arg2: i32) -> (i32, i32) {
    %c0_i32 = arith.constant 0 : i32
    %c0_i32_0 = arith.constant 0 : i32
    return %c0_i32, %arg2 : i32, i32
  }
  func.func @transform_4(%arg0: i32, %arg1: i32, %arg2: i32) -> (i32, i32) {
    %c0_i32 = arith.constant 0 : i32
    %c0_i32_0 = arith.constant 0 : i32
    return %c0_i32, %arg2 : i32, i32
  }
  func.func @transform_5(%arg0: i32, %arg1: i32, %arg2: i32) -> (i32, i32) {
    %c0_i32 = arith.constant 0 : i32
    return %arg0, %arg1 : i32, i32
  }
}

module attributes {stable_mosaic.version = 11 : i64} {
  func.func @_attn_kernel(%arg0: i32, %arg1: memref<1x16x384xbf16, #tpu.memory_space<vmem>>, %arg2: memref<16x32xf32, #tpu.memory_space<vmem>>, %arg3: memref<16x32xf32, #tpu.memory_space<vmem>>, %arg4: memref<1x16x128xbf16, #tpu.memory_space<vmem>>) attributes {dimension_semantics = [#tpu.dimension_semantics<parallel>], iteration_bounds = array<i64: 2>, scalar_prefetch = 0 : i64, scratch_operands = 0 : i64, tpu.core_type = #tpu.core_type<tc>, window_params = [{transform_indices = @transform_0, window_bounds = array<i64: 1, 16, 384>}, {pipeline_mode = #tpu.pipeline_mode<synchronous>, transform_indices = @transform_1, window_bounds = array<i64: 16, 32>}, {pipeline_mode = #tpu.pipeline_mode<synchronous>, transform_indices = @transform_2, window_bounds = array<i64: 16, 32>}, {transform_indices = @transform_3, window_bounds = array<i64: 1, 16, 128>}]} {
    %c0 = arith.constant 0 : index
    %c0_0 = arith.constant 0 : index
    %c0_1 = arith.constant 0 : index
    %0 = vector.load %arg1[%c0, %c0_0, %c0_1] : memref<1x16x384xbf16, #tpu.memory_space<vmem>>, vector<1x16x384xbf16>
    %1 = vector.shape_cast %0 : vector<1x16x384xbf16> to vector<16x384xbf16>
    %c0_2 = arith.constant 0 : index
    %c0_3 = arith.constant 0 : index
    %2 = vector.load %arg2[%c0_2, %c0_3] : memref<16x32xf32, #tpu.memory_space<vmem>>, vector<16x32xf32>
    %c0_4 = arith.constant 0 : index
    %c0_5 = arith.constant 0 : index
    %3 = vector.load %arg3[%c0_4, %c0_5] : memref<16x32xf32, #tpu.memory_space<vmem>>, vector<16x32xf32>
    %4 = tpu.iota {dimensions = array<i32: 0>} : vector<16x16xi32>
    %5 = tpu.iota {dimensions = array<i32: 1>} : vector<16x16xi32>
    %6 = arith.cmpi sle, %5, %4 : vector<16x16xi32>
    %7 = vector.extract_strided_slice %1 {offsets = [0, 0], sizes = [16, 32], strides = [1, 1]} : vector<16x384xbf16> to vector<16x32xbf16>
    %8 = arith.extf %7 : vector<16x32xbf16> to vector<16x32xf32>
    %9 = vector.extract_strided_slice %1 {offsets = [0, 128], sizes = [16, 32], strides = [1, 1]} : vector<16x384xbf16> to vector<16x32xbf16>
    %10 = arith.extf %9 : vector<16x32xbf16> to vector<16x32xf32>
    %11 = vector.extract_strided_slice %1 {offsets = [0, 256], sizes = [16, 32], strides = [1, 1]} : vector<16x384xbf16> to vector<16x32xbf16>
    %12 = arith.mulf %8, %2 : vector<16x32xf32>
    %13 = vector.extract_strided_slice %8 {offsets = [0, 16], sizes = [16, 16], strides = [1, 1]} : vector<16x32xf32> to vector<16x16xf32>
    %cst = arith.constant 0.000000e+00 : f32
    %14 = vector.broadcast %cst : f32 to vector<16x16xf32>
    %15 = arith.subf %14, %13 : vector<16x16xf32>
    %16 = vector.extract_strided_slice %8 {offsets = [0, 0], sizes = [16, 16], strides = [1, 1]} : vector<16x32xf32> to vector<16x16xf32>
    %17 = tpu.concatenate %15, %16 in 1 : vector<16x16xf32>, vector<16x16xf32> -> vector<16x32xf32>
    %18 = arith.mulf %17, %3 : vector<16x32xf32>
    %19 = arith.addf %12, %18 : vector<16x32xf32>
    %20 = arith.mulf %10, %2 : vector<16x32xf32>
    %21 = vector.extract_strided_slice %10 {offsets = [0, 16], sizes = [16, 16], strides = [1, 1]} : vector<16x32xf32> to vector<16x16xf32>
    %cst_6 = arith.constant 0.000000e+00 : f32
    %22 = vector.broadcast %cst_6 : f32 to vector<16x16xf32>
    %23 = arith.subf %22, %21 : vector<16x16xf32>
    %24 = vector.extract_strided_slice %10 {offsets = [0, 0], sizes = [16, 16], strides = [1, 1]} : vector<16x32xf32> to vector<16x16xf32>
    %25 = tpu.concatenate %23, %24 in 1 : vector<16x16xf32>, vector<16x16xf32> -> vector<16x32xf32>
    %26 = arith.mulf %25, %3 : vector<16x32xf32>
    %27 = arith.addf %20, %26 : vector<16x32xf32>
    %cst_7 = arith.constant 0.176776692 : f32
    %28 = vector.broadcast %cst_7 : f32 to vector<16x32xf32>
    %29 = arith.mulf %19, %28 : vector<16x32xf32>
    %30 = arith.truncf %29 : vector<16x32xf32> to vector<16x32xbf16>
    %31 = arith.truncf %27 : vector<16x32xf32> to vector<16x32xbf16>
    %cst_8 = arith.constant dense<0.000000e+00> : vector<16x16xf32>
    %32 = tpu.matmul %30, %31, %cst_8 {dimension_numbers = #tpu.dot_dimension_numbers<[1], [1], [0], [0], [0, 0, 1, 0], [], []>} : vector<16x32xbf16>, vector<16x32xbf16>, vector<16x16xf32> -> vector<16x16xf32>
    %cst_9 = arith.constant -1.000000e+30 : f32
    %33 = vector.broadcast %cst_9 : f32 to vector<16x16xf32>
    %34 = arith.select %6, %32, %33 : vector<16x16xi1>, vector<16x16xf32>
    %cst_10 = arith.constant dense<0xFF800000> : vector<16xf32>
    %35 = vector.multi_reduction <maximumf>, %34, %cst_10 [1] : vector<16x16xf32> to vector<16xf32>
    %36 = vector.shape_cast %35 : vector<16xf32> to vector<16x1xf32>
    %37 = vector.broadcast %36 : vector<16x1xf32> to vector<16x16xf32>
    %38 = arith.subf %34, %37 : vector<16x16xf32>
    %39 = math.exp %38 : vector<16x16xf32>
    %cst_11 = arith.constant dense<0.000000e+00> : vector<16xf32>
    %40 = vector.multi_reduction <add>, %39, %cst_11 [1] : vector<16x16xf32> to vector<16xf32>
    %41 = vector.shape_cast %40 : vector<16xf32> to vector<16x1xf32>
    %42 = arith.truncf %39 : vector<16x16xf32> to vector<16x16xbf16>
    %cst_12 = arith.constant dense<0.000000e+00> : vector<16x32xf32>
    %43 = tpu.matmul %42, %11, %cst_12 {dimension_numbers = #tpu.dot_dimension_numbers<[1], [0], [0], [1], [0, 0, 1, 1], [], []>} : vector<16x16xbf16>, vector<16x32xbf16>, vector<16x32xf32> -> vector<16x32xf32>
    %44 = tpu.reciprocal %41 {approx = true} : vector<16x1xf32> -> vector<16x1xf32>
    %45 = vector.broadcast %44 : vector<16x1xf32> to vector<16x32xf32>
    %46 = arith.mulf %43, %45 : vector<16x32xf32>
    %47 = vector.extract_strided_slice %1 {offsets = [0, 32], sizes = [16, 32], strides = [1, 1]} : vector<16x384xbf16> to vector<16x32xbf16>
    %48 = arith.extf %47 : vector<16x32xbf16> to vector<16x32xf32>
    %49 = vector.extract_strided_slice %1 {offsets = [0, 160], sizes = [16, 32], strides = [1, 1]} : vector<16x384xbf16> to vector<16x32xbf16>
    %50 = arith.extf %49 : vector<16x32xbf16> to vector<16x32xf32>
    %51 = vector.extract_strided_slice %1 {offsets = [0, 288], sizes = [16, 32], strides = [1, 1]} : vector<16x384xbf16> to vector<16x32xbf16>
    %52 = arith.mulf %48, %2 : vector<16x32xf32>
    %53 = vector.extract_strided_slice %48 {offsets = [0, 16], sizes = [16, 16], strides = [1, 1]} : vector<16x32xf32> to vector<16x16xf32>
    %cst_13 = arith.constant 0.000000e+00 : f32
    %54 = vector.broadcast %cst_13 : f32 to vector<16x16xf32>
    %55 = arith.subf %54, %53 : vector<16x16xf32>
    %56 = vector.extract_strided_slice %48 {offsets = [0, 0], sizes = [16, 16], strides = [1, 1]} : vector<16x32xf32> to vector<16x16xf32>
    %57 = tpu.concatenate %55, %56 in 1 : vector<16x16xf32>, vector<16x16xf32> -> vector<16x32xf32>
    %58 = arith.mulf %57, %3 : vector<16x32xf32>
    %59 = arith.addf %52, %58 : vector<16x32xf32>
    %60 = arith.mulf %50, %2 : vector<16x32xf32>
    %61 = vector.extract_strided_slice %50 {offsets = [0, 16], sizes = [16, 16], strides = [1, 1]} : vector<16x32xf32> to vector<16x16xf32>
    %cst_14 = arith.constant 0.000000e+00 : f32
    %62 = vector.broadcast %cst_14 : f32 to vector<16x16xf32>
    %63 = arith.subf %62, %61 : vector<16x16xf32>
    %64 = vector.extract_strided_slice %50 {offsets = [0, 0], sizes = [16, 16], strides = [1, 1]} : vector<16x32xf32> to vector<16x16xf32>
    %65 = tpu.concatenate %63, %64 in 1 : vector<16x16xf32>, vector<16x16xf32> -> vector<16x32xf32>
    %66 = arith.mulf %65, %3 : vector<16x32xf32>
    %67 = arith.addf %60, %66 : vector<16x32xf32>
    %cst_15 = arith.constant 0.176776692 : f32
    %68 = vector.broadcast %cst_15 : f32 to vector<16x32xf32>
    %69 = arith.mulf %59, %68 : vector<16x32xf32>
    %70 = arith.truncf %69 : vector<16x32xf32> to vector<16x32xbf16>
    %71 = arith.truncf %67 : vector<16x32xf32> to vector<16x32xbf16>
    %cst_16 = arith.constant dense<0.000000e+00> : vector<16x16xf32>
    %72 = tpu.matmul %70, %71, %cst_16 {dimension_numbers = #tpu.dot_dimension_numbers<[1], [1], [0], [0], [0, 0, 1, 0], [], []>} : vector<16x32xbf16>, vector<16x32xbf16>, vector<16x16xf32> -> vector<16x16xf32>
    %cst_17 = arith.constant -1.000000e+30 : f32
    %73 = vector.broadcast %cst_17 : f32 to vector<16x16xf32>
    %74 = arith.select %6, %72, %73 : vector<16x16xi1>, vector<16x16xf32>
    %cst_18 = arith.constant dense<0xFF800000> : vector<16xf32>
    %75 = vector.multi_reduction <maximumf>, %74, %cst_18 [1] : vector<16x16xf32> to vector<16xf32>
    %76 = vector.shape_cast %75 : vector<16xf32> to vector<16x1xf32>
    %77 = vector.broadcast %76 : vector<16x1xf32> to vector<16x16xf32>
    %78 = arith.subf %74, %77 : vector<16x16xf32>
    %79 = math.exp %78 : vector<16x16xf32>
    %cst_19 = arith.constant dense<0.000000e+00> : vector<16xf32>
    %80 = vector.multi_reduction <add>, %79, %cst_19 [1] : vector<16x16xf32> to vector<16xf32>
    %81 = vector.shape_cast %80 : vector<16xf32> to vector<16x1xf32>
    %82 = arith.truncf %79 : vector<16x16xf32> to vector<16x16xbf16>
    %cst_20 = arith.constant dense<0.000000e+00> : vector<16x32xf32>
    %83 = tpu.matmul %82, %51, %cst_20 {dimension_numbers = #tpu.dot_dimension_numbers<[1], [0], [0], [1], [0, 0, 1, 1], [], []>} : vector<16x16xbf16>, vector<16x32xbf16>, vector<16x32xf32> -> vector<16x32xf32>
    %84 = tpu.reciprocal %81 {approx = true} : vector<16x1xf32> -> vector<16x1xf32>
    %85 = vector.broadcast %84 : vector<16x1xf32> to vector<16x32xf32>
    %86 = arith.mulf %83, %85 : vector<16x32xf32>
    %87 = vector.extract_strided_slice %1 {offsets = [0, 64], sizes = [16, 32], strides = [1, 1]} : vector<16x384xbf16> to vector<16x32xbf16>
    %88 = arith.extf %87 : vector<16x32xbf16> to vector<16x32xf32>
    %89 = vector.extract_strided_slice %1 {offsets = [0, 192], sizes = [16, 32], strides = [1, 1]} : vector<16x384xbf16> to vector<16x32xbf16>
    %90 = arith.extf %89 : vector<16x32xbf16> to vector<16x32xf32>
    %91 = vector.extract_strided_slice %1 {offsets = [0, 320], sizes = [16, 32], strides = [1, 1]} : vector<16x384xbf16> to vector<16x32xbf16>
    %92 = arith.mulf %88, %2 : vector<16x32xf32>
    %93 = vector.extract_strided_slice %88 {offsets = [0, 16], sizes = [16, 16], strides = [1, 1]} : vector<16x32xf32> to vector<16x16xf32>
    %cst_21 = arith.constant 0.000000e+00 : f32
    %94 = vector.broadcast %cst_21 : f32 to vector<16x16xf32>
    %95 = arith.subf %94, %93 : vector<16x16xf32>
    %96 = vector.extract_strided_slice %88 {offsets = [0, 0], sizes = [16, 16], strides = [1, 1]} : vector<16x32xf32> to vector<16x16xf32>
    %97 = tpu.concatenate %95, %96 in 1 : vector<16x16xf32>, vector<16x16xf32> -> vector<16x32xf32>
    %98 = arith.mulf %97, %3 : vector<16x32xf32>
    %99 = arith.addf %92, %98 : vector<16x32xf32>
    %100 = arith.mulf %90, %2 : vector<16x32xf32>
    %101 = vector.extract_strided_slice %90 {offsets = [0, 16], sizes = [16, 16], strides = [1, 1]} : vector<16x32xf32> to vector<16x16xf32>
    %cst_22 = arith.constant 0.000000e+00 : f32
    %102 = vector.broadcast %cst_22 : f32 to vector<16x16xf32>
    %103 = arith.subf %102, %101 : vector<16x16xf32>
    %104 = vector.extract_strided_slice %90 {offsets = [0, 0], sizes = [16, 16], strides = [1, 1]} : vector<16x32xf32> to vector<16x16xf32>
    %105 = tpu.concatenate %103, %104 in 1 : vector<16x16xf32>, vector<16x16xf32> -> vector<16x32xf32>
    %106 = arith.mulf %105, %3 : vector<16x32xf32>
    %107 = arith.addf %100, %106 : vector<16x32xf32>
    %cst_23 = arith.constant 0.176776692 : f32
    %108 = vector.broadcast %cst_23 : f32 to vector<16x32xf32>
    %109 = arith.mulf %99, %108 : vector<16x32xf32>
    %110 = arith.truncf %109 : vector<16x32xf32> to vector<16x32xbf16>
    %111 = arith.truncf %107 : vector<16x32xf32> to vector<16x32xbf16>
    %cst_24 = arith.constant dense<0.000000e+00> : vector<16x16xf32>
    %112 = tpu.matmul %110, %111, %cst_24 {dimension_numbers = #tpu.dot_dimension_numbers<[1], [1], [0], [0], [0, 0, 1, 0], [], []>} : vector<16x32xbf16>, vector<16x32xbf16>, vector<16x16xf32> -> vector<16x16xf32>
    %cst_25 = arith.constant -1.000000e+30 : f32
    %113 = vector.broadcast %cst_25 : f32 to vector<16x16xf32>
    %114 = arith.select %6, %112, %113 : vector<16x16xi1>, vector<16x16xf32>
    %cst_26 = arith.constant dense<0xFF800000> : vector<16xf32>
    %115 = vector.multi_reduction <maximumf>, %114, %cst_26 [1] : vector<16x16xf32> to vector<16xf32>
    %116 = vector.shape_cast %115 : vector<16xf32> to vector<16x1xf32>
    %117 = vector.broadcast %116 : vector<16x1xf32> to vector<16x16xf32>
    %118 = arith.subf %114, %117 : vector<16x16xf32>
    %119 = math.exp %118 : vector<16x16xf32>
    %cst_27 = arith.constant dense<0.000000e+00> : vector<16xf32>
    %120 = vector.multi_reduction <add>, %119, %cst_27 [1] : vector<16x16xf32> to vector<16xf32>
    %121 = vector.shape_cast %120 : vector<16xf32> to vector<16x1xf32>
    %122 = arith.truncf %119 : vector<16x16xf32> to vector<16x16xbf16>
    %cst_28 = arith.constant dense<0.000000e+00> : vector<16x32xf32>
    %123 = tpu.matmul %122, %91, %cst_28 {dimension_numbers = #tpu.dot_dimension_numbers<[1], [0], [0], [1], [0, 0, 1, 1], [], []>} : vector<16x16xbf16>, vector<16x32xbf16>, vector<16x32xf32> -> vector<16x32xf32>
    %124 = tpu.reciprocal %121 {approx = true} : vector<16x1xf32> -> vector<16x1xf32>
    %125 = vector.broadcast %124 : vector<16x1xf32> to vector<16x32xf32>
    %126 = arith.mulf %123, %125 : vector<16x32xf32>
    %127 = vector.extract_strided_slice %1 {offsets = [0, 96], sizes = [16, 32], strides = [1, 1]} : vector<16x384xbf16> to vector<16x32xbf16>
    %128 = arith.extf %127 : vector<16x32xbf16> to vector<16x32xf32>
    %129 = vector.extract_strided_slice %1 {offsets = [0, 224], sizes = [16, 32], strides = [1, 1]} : vector<16x384xbf16> to vector<16x32xbf16>
    %130 = arith.extf %129 : vector<16x32xbf16> to vector<16x32xf32>
    %131 = vector.extract_strided_slice %1 {offsets = [0, 352], sizes = [16, 32], strides = [1, 1]} : vector<16x384xbf16> to vector<16x32xbf16>
    %132 = arith.mulf %128, %2 : vector<16x32xf32>
    %133 = vector.extract_strided_slice %128 {offsets = [0, 16], sizes = [16, 16], strides = [1, 1]} : vector<16x32xf32> to vector<16x16xf32>
    %cst_29 = arith.constant 0.000000e+00 : f32
    %134 = vector.broadcast %cst_29 : f32 to vector<16x16xf32>
    %135 = arith.subf %134, %133 : vector<16x16xf32>
    %136 = vector.extract_strided_slice %128 {offsets = [0, 0], sizes = [16, 16], strides = [1, 1]} : vector<16x32xf32> to vector<16x16xf32>
    %137 = tpu.concatenate %135, %136 in 1 : vector<16x16xf32>, vector<16x16xf32> -> vector<16x32xf32>
    %138 = arith.mulf %137, %3 : vector<16x32xf32>
    %139 = arith.addf %132, %138 : vector<16x32xf32>
    %140 = arith.mulf %130, %2 : vector<16x32xf32>
    %141 = vector.extract_strided_slice %130 {offsets = [0, 16], sizes = [16, 16], strides = [1, 1]} : vector<16x32xf32> to vector<16x16xf32>
    %cst_30 = arith.constant 0.000000e+00 : f32
    %142 = vector.broadcast %cst_30 : f32 to vector<16x16xf32>
    %143 = arith.subf %142, %141 : vector<16x16xf32>
    %144 = vector.extract_strided_slice %130 {offsets = [0, 0], sizes = [16, 16], strides = [1, 1]} : vector<16x32xf32> to vector<16x16xf32>
    %145 = tpu.concatenate %143, %144 in 1 : vector<16x16xf32>, vector<16x16xf32> -> vector<16x32xf32>
    %146 = arith.mulf %145, %3 : vector<16x32xf32>
    %147 = arith.addf %140, %146 : vector<16x32xf32>
    %cst_31 = arith.constant 0.176776692 : f32
    %148 = vector.broadcast %cst_31 : f32 to vector<16x32xf32>
    %149 = arith.mulf %139, %148 : vector<16x32xf32>
    %150 = arith.truncf %149 : vector<16x32xf32> to vector<16x32xbf16>
    %151 = arith.truncf %147 : vector<16x32xf32> to vector<16x32xbf16>
    %cst_32 = arith.constant dense<0.000000e+00> : vector<16x16xf32>
    %152 = tpu.matmul %150, %151, %cst_32 {dimension_numbers = #tpu.dot_dimension_numbers<[1], [1], [0], [0], [0, 0, 1, 0], [], []>} : vector<16x32xbf16>, vector<16x32xbf16>, vector<16x16xf32> -> vector<16x16xf32>
    %cst_33 = arith.constant -1.000000e+30 : f32
    %153 = vector.broadcast %cst_33 : f32 to vector<16x16xf32>
    %154 = arith.select %6, %152, %153 : vector<16x16xi1>, vector<16x16xf32>
    %cst_34 = arith.constant dense<0xFF800000> : vector<16xf32>
    %155 = vector.multi_reduction <maximumf>, %154, %cst_34 [1] : vector<16x16xf32> to vector<16xf32>
    %156 = vector.shape_cast %155 : vector<16xf32> to vector<16x1xf32>
    %157 = vector.broadcast %156 : vector<16x1xf32> to vector<16x16xf32>
    %158 = arith.subf %154, %157 : vector<16x16xf32>
    %159 = math.exp %158 : vector<16x16xf32>
    %cst_35 = arith.constant dense<0.000000e+00> : vector<16xf32>
    %160 = vector.multi_reduction <add>, %159, %cst_35 [1] : vector<16x16xf32> to vector<16xf32>
    %161 = vector.shape_cast %160 : vector<16xf32> to vector<16x1xf32>
    %162 = arith.truncf %159 : vector<16x16xf32> to vector<16x16xbf16>
    %cst_36 = arith.constant dense<0.000000e+00> : vector<16x32xf32>
    %163 = tpu.matmul %162, %131, %cst_36 {dimension_numbers = #tpu.dot_dimension_numbers<[1], [0], [0], [1], [0, 0, 1, 1], [], []>} : vector<16x16xbf16>, vector<16x32xbf16>, vector<16x32xf32> -> vector<16x32xf32>
    %164 = tpu.reciprocal %161 {approx = true} : vector<16x1xf32> -> vector<16x1xf32>
    %165 = vector.broadcast %164 : vector<16x1xf32> to vector<16x32xf32>
    %166 = arith.mulf %163, %165 : vector<16x32xf32>
    %167 = tpu.concatenate %46, %86, %126, %166 in 1 : vector<16x32xf32>, vector<16x32xf32>, vector<16x32xf32>, vector<16x32xf32> -> vector<16x128xf32>
    %168 = arith.truncf %167 : vector<16x128xf32> to vector<16x128xbf16>
    %c0_37 = arith.constant 0 : index
    %c0_38 = arith.constant 0 : index
    %c0_39 = arith.constant 0 : index
    %169 = vector.load %arg4[%c0_37, %c0_38, %c0_39] : memref<1x16x128xbf16, #tpu.memory_space<vmem>>, vector<1x16x128xbf16>
    %170 = vector.shape_cast %169 : vector<1x16x128xbf16> to vector<16x128xbf16>
    %171 = vector.shape_cast %168 : vector<16x128xbf16> to vector<1x16x128xbf16>
    tpu.vector_store %arg4[%c0_37, %c0_38, %c0_39], %171 {strides = array<i32>} : memref<1x16x128xbf16, #tpu.memory_space<vmem>>, vector<1x16x128xbf16>,
    return
  }
  func.func @transform_0(%arg0: i32) -> (i32, i32, i32) {
    %c0_i32 = arith.constant 0 : i32
    %c0_i32_0 = arith.constant 0 : i32
    %c0_i32_1 = arith.constant 0 : i32
    return %arg0, %c0_i32, %c0_i32_0 : i32, i32, i32
  }
  func.func @transform_1(%arg0: i32) -> (i32, i32) {
    %c0_i32 = arith.constant 0 : i32
    %c0_i32_0 = arith.constant 0 : i32
    %c0_i32_1 = arith.constant 0 : i32
    return %c0_i32, %c0_i32_0 : i32, i32
  }
  func.func @transform_2(%arg0: i32) -> (i32, i32) {
    %c0_i32 = arith.constant 0 : i32
    %c0_i32_0 = arith.constant 0 : i32
    %c0_i32_1 = arith.constant 0 : i32
    return %c0_i32, %c0_i32_0 : i32, i32
  }
  func.func @transform_3(%arg0: i32) -> (i32, i32, i32) {
    %c0_i32 = arith.constant 0 : i32
    %c0_i32_0 = arith.constant 0 : i32
    %c0_i32_1 = arith.constant 0 : i32
    return %arg0, %c0_i32, %c0_i32_0 : i32, i32, i32
  }
}

module attributes {stable_mosaic.version = 11 : i64} {
  func.func @_fused_matmul_kernel(%arg0: i32, %arg1: i32, %arg2: i32, %arg3: memref<32x256xbf16, #tpu.memory_space<vmem>>, %arg4: memref<256x128xbf16, #tpu.memory_space<vmem>>, %arg5: memref<1x128xf32, #tpu.memory_space<vmem>>, %arg6: memref<32x128xbf16, #tpu.memory_space<vmem>>, %arg7: memref<32x128xbf16, #tpu.memory_space<vmem>>, %arg8: memref<32x128xf32, #tpu.memory_space<vmem>>) attributes {dimension_semantics = [#tpu.dimension_semantics<parallel>, #tpu.dimension_semantics<parallel>, #tpu.dimension_semantics<arbitrary>], iteration_bounds = array<i64: 1, 1, 1>, scalar_prefetch = 0 : i64, scratch_operands = 1 : i64, tpu.core_type = #tpu.core_type<tc>, window_params = [{transform_indices = @transform_0, window_bounds = array<i64: 32, 256>}, {transform_indices = @transform_1, window_bounds = array<i64: 256, 128>}, {transform_indices = @transform_2, window_bounds = array<i64: 1, 128>}, {transform_indices = @transform_3, window_bounds = array<i64: 32, 128>}, {transform_indices = @transform_4, window_bounds = array<i64: 32, 128>}]} {
    %c0_i32 = arith.constant 0 : i32
    %0 = arith.cmpi eq, %arg2, %c0_i32 : i32
    %1 = arith.extui %0 : i1 to i32
    %c0_i32_0 = arith.constant 0 : i32
    %2 = arith.cmpi ne, %1, %c0_i32_0 : i32
    scf.if %2 {
      %cst_10 = arith.constant 0.000000e+00 : f32
      %14 = vector.broadcast %cst_10 : f32 to vector<32x128xf32>
      %c0_11 = arith.constant 0 : index
      %c0_12 = arith.constant 0 : index
      %15 = vector.load %arg8[%c0_11, %c0_12] : memref<32x128xf32, #tpu.memory_space<vmem>>, vector<32x128xf32>
      tpu.vector_store %arg8[%c0_11, %c0_12], %14 {strides = array<i32>} : memref<32x128xf32, #tpu.memory_space<vmem>>, vector<32x128xf32>,
    } else {
    }
    %c0 = arith.constant 0 : index
    %c0_1 = arith.constant 0 : index
    %3 = vector.load %arg3[%c0, %c0_1] : memref<32x256xbf16, #tpu.memory_space<vmem>>, vector<32x256xbf16>
    %4 = arith.extf %3 : vector<32x256xbf16> to vector<32x256xf32>
    %c0_2 = arith.constant 0 : index
    %c0_3 = arith.constant 0 : index
    %5 = vector.load %arg8[%c0_2, %c0_3] : memref<32x128xf32, #tpu.memory_space<vmem>>, vector<32x128xf32>
    %6 = arith.truncf %4 : vector<32x256xf32> to vector<32x256xbf16>
    %c0_4 = arith.constant 0 : index
    %c0_5 = arith.constant 0 : index
    %7 = vector.load %arg4[%c0_4, %c0_5] : memref<256x128xbf16, #tpu.memory_space<vmem>>, vector<256x128xbf16>
    %cst = arith.constant dense<0.000000e+00> : vector<32x128xf32>
    %8 = tpu.matmul %6, %7, %cst {dimension_numbers = #tpu.dot_dimension_numbers<[1], [0], [0], [1], [0, 0, 1, 1], [], []>} : vector<32x256xbf16>, vector<256x128xbf16>, vector<32x128xf32> -> vector<32x128xf32>
    %9 = arith.addf %5, %8 : vector<32x128xf32>
    %c0_6 = arith.constant 0 : index
    %c0_7 = arith.constant 0 : index
    %10 = vector.load %arg8[%c0_6, %c0_7] : memref<32x128xf32, #tpu.memory_space<vmem>>, vector<32x128xf32>
    tpu.vector_store %arg8[%c0_6, %c0_7], %9 {strides = array<i32>} : memref<32x128xf32, #tpu.memory_space<vmem>>, vector<32x128xf32>,
    %c0_i32_8 = arith.constant 0 : i32
    %11 = arith.cmpi eq, %arg2, %c0_i32_8 : i32
    %12 = arith.extui %11 : i1 to i32
    %c0_i32_9 = arith.constant 0 : i32
    %13 = arith.cmpi ne, %12, %c0_i32_9 : i32
    scf.if %13 {
      %c0_10 = arith.constant 0 : index
      %c0_11 = arith.constant 0 : index
      %14 = vector.load %arg8[%c0_10, %c0_11] : memref<32x128xf32, #tpu.memory_space<vmem>>, vector<32x128xf32>
      %c0_12 = arith.constant 0 : index
      %c0_13 = arith.constant 0 : index
      %15 = vector.load %arg5[%c0_12, %c0_13] : memref<1x128xf32, #tpu.memory_space<vmem>>, vector<1x128xf32>
      %16 = vector.broadcast %15 : vector<1x128xf32> to vector<32x128xf32>
      %17 = arith.addf %14, %16 : vector<32x128xf32>
      %c0_14 = arith.constant 0 : index
      %c0_15 = arith.constant 0 : index
      %18 = vector.load %arg6[%c0_14, %c0_15] : memref<32x128xbf16, #tpu.memory_space<vmem>>, vector<32x128xbf16>
      %19 = arith.extf %18 : vector<32x128xbf16> to vector<32x128xf32>
      %20 = arith.addf %17, %19 : vector<32x128xf32>
      %21 = arith.truncf %20 : vector<32x128xf32> to vector<32x128xbf16>
      %c0_16 = arith.constant 0 : index
      %c0_17 = arith.constant 0 : index
      %22 = vector.load %arg7[%c0_16, %c0_17] : memref<32x128xbf16, #tpu.memory_space<vmem>>, vector<32x128xbf16>
      tpu.vector_store %arg7[%c0_16, %c0_17], %21 {strides = array<i32>} : memref<32x128xbf16, #tpu.memory_space<vmem>>, vector<32x128xbf16>,
    } else {
    }
    return
  }
  func.func @transform_0(%arg0: i32, %arg1: i32, %arg2: i32) -> (i32, i32) {
    %c0_i32 = arith.constant 0 : i32
    return %arg0, %arg2 : i32, i32
  }
  func.func @transform_1(%arg0: i32, %arg1: i32, %arg2: i32) -> (i32, i32) {
    %c0_i32 = arith.constant 0 : i32
    return %arg2, %arg1 : i32, i32
  }
  func.func @transform_2(%arg0: i32, %arg1: i32, %arg2: i32) -> (i32, i32) {
    %c0_i32 = arith.constant 0 : i32
    %c0_i32_0 = arith.constant 0 : i32
    return %c0_i32, %arg1 : i32, i32
  }
  func.func @transform_3(%arg0: i32, %arg1: i32, %arg2: i32) -> (i32, i32) {
    %c0_i32 = arith.constant 0 : i32
    return %arg0, %arg1 : i32, i32
  }
  func.func @transform_4(%arg0: i32, %arg1: i32, %arg2: i32) -> (i32, i32) {
    %c0_i32 = arith.constant 0 : i32
    return %arg0, %arg1 : i32, i32
  }
}

module attributes {stable_mosaic.version = 11 : i64} {
  func.func @_fused_matmul_kernel(%arg0: i32, %arg1: i32, %arg2: i32, %arg3: memref<32x128xbf16, #tpu.memory_space<vmem>>, %arg4: memref<128x256xbf16, #tpu.memory_space<vmem>>, %arg5: memref<1x256xf32, #tpu.memory_space<vmem>>, %arg6: memref<1x128xf32, #tpu.memory_space<vmem>>, %arg7: memref<1x128xf32, #tpu.memory_space<vmem>>, %arg8: memref<32x256xf32, #tpu.memory_space<vmem>>, %arg9: memref<32x256xf32, #tpu.memory_space<vmem>>) attributes {dimension_semantics = [#tpu.dimension_semantics<parallel>, #tpu.dimension_semantics<parallel>, #tpu.dimension_semantics<arbitrary>], iteration_bounds = array<i64: 1, 1, 1>, scalar_prefetch = 0 : i64, scratch_operands = 1 : i64, tpu.core_type = #tpu.core_type<tc>, window_params = [{transform_indices = @transform_0, window_bounds = array<i64: 32, 128>}, {transform_indices = @transform_1, window_bounds = array<i64: 128, 256>}, {transform_indices = @transform_2, window_bounds = array<i64: 1, 256>}, {transform_indices = @transform_3, window_bounds = array<i64: 1, 128>}, {transform_indices = @transform_4, window_bounds = array<i64: 1, 128>}, {transform_indices = @transform_5, window_bounds = array<i64: 32, 256>}]} {
    %c0_i32 = arith.constant 0 : i32
    %0 = arith.cmpi eq, %arg2, %c0_i32 : i32
    %1 = arith.extui %0 : i1 to i32
    %c0_i32_0 = arith.constant 0 : i32
    %2 = arith.cmpi ne, %1, %c0_i32_0 : i32
    scf.if %2 {
      %cst_19 = arith.constant 0.000000e+00 : f32
      %38 = vector.broadcast %cst_19 : f32 to vector<32x256xf32>
      %c0_20 = arith.constant 0 : index
      %c0_21 = arith.constant 0 : index
      %39 = vector.load %arg9[%c0_20, %c0_21] : memref<32x256xf32, #tpu.memory_space<vmem>>, vector<32x256xf32>
      tpu.vector_store %arg9[%c0_20, %c0_21], %38 {strides = array<i32>} : memref<32x256xf32, #tpu.memory_space<vmem>>, vector<32x256xf32>,
    } else {
    }
    %c0 = arith.constant 0 : index
    %c0_1 = arith.constant 0 : index
    %3 = vector.load %arg3[%c0, %c0_1] : memref<32x128xbf16, #tpu.memory_space<vmem>>, vector<32x128xbf16>
    %4 = arith.extf %3 : vector<32x128xbf16> to vector<32x128xf32>
    %cst = arith.constant dense<0.000000e+00> : vector<32xf32>
    %5 = vector.multi_reduction <add>, %4, %cst [1] : vector<32x128xf32> to vector<32xf32>
    %6 = vector.shape_cast %5 : vector<32xf32> to vector<32x1xf32>
    %cst_2 = arith.constant 1.280000e+02 : f32
    %7 = vector.broadcast %cst_2 : f32 to vector<32x1xf32>
    %8 = arith.divf %6, %7 : vector<32x1xf32>
    %9 = vector.broadcast %8 : vector<32x1xf32> to vector<32x128xf32>
    %10 = arith.subf %4, %9 : vector<32x128xf32>
    %11 = arith.mulf %10, %10 : vector<32x128xf32>
    %cst_3 = arith.constant dense<0.000000e+00> : vector<32xf32>
    %12 = vector.multi_reduction <add>, %11, %cst_3 [1] : vector<32x128xf32> to vector<32xf32>
    %13 = vector.shape_cast %12 : vector<32xf32> to vector<32x1xf32>
    %cst_4 = arith.constant 1.280000e+02 : f32
    %14 = vector.broadcast %cst_4 : f32 to vector<32x1xf32>
    %15 = arith.divf %13, %14 : vector<32x1xf32>
    %16 = vector.broadcast %8 : vector<32x1xf32> to vector<32x128xf32>
    %17 = arith.subf %4, %16 : vector<32x128xf32>
    %cst_5 = arith.constant 9.99999974E-6 : f32
    %18 = vector.broadcast %cst_5 : f32 to vector<32x1xf32>
    %19 = arith.addf %15, %18 : vector<32x1xf32>
    %20 = math.rsqrt %19 : vector<32x1xf32>
    %21 = vector.broadcast %20 : vector<32x1xf32> to vector<32x128xf32>
    %22 = arith.mulf %17, %21 : vector<32x128xf32>
    %c0_6 = arith.constant 0 : index
    %c0_7 = arith.constant 0 : index
    %23 = vector.load %arg6[%c0_6, %c0_7] : memref<1x128xf32, #tpu.memory_space<vmem>>, vector<1x128xf32>
    %24 = vector.broadcast %23 : vector<1x128xf32> to vector<32x128xf32>
    %25 = arith.mulf %22, %24 : vector<32x128xf32>
    %c0_8 = arith.constant 0 : index
    %c0_9 = arith.constant 0 : index
    %26 = vector.load %arg7[%c0_8, %c0_9] : memref<1x128xf32, #tpu.memory_space<vmem>>, vector<1x128xf32>
    %27 = vector.broadcast %26 : vector<1x128xf32> to vector<32x128xf32>
    %28 = arith.addf %25, %27 : vector<32x128xf32>
    %c0_10 = arith.constant 0 : index
    %c0_11 = arith.constant 0 : index
    %29 = vector.load %arg9[%c0_10, %c0_11] : memref<32x256xf32, #tpu.memory_space<vmem>>, vector<32x256xf32>
    %30 = arith.truncf %28 : vector<32x128xf32> to vector<32x128xbf16>
    %c0_12 = arith.constant 0 : index
    %c0_13 = arith.constant 0 : index
    %31 = vector.load %arg4[%c0_12, %c0_13] : memref<128x256xbf16, #tpu.memory_space<vmem>>, vector<128x256xbf16>
    %cst_14 = arith.constant dense<0.000000e+00> : vector<32x256xf32>
    %32 = tpu.matmul %30, %31, %cst_14 {dimension_numbers = #tpu.dot_dimension_numbers<[1], [0], [0], [1], [0, 0, 1, 1], [], []>} : vector<32x128xbf16>, vector<128x256xbf16>, vector<32x256xf32> -> vector<32x256xf32>
    %33 = arith.addf %29, %32 : vector<32x256xf32>
    %c0_15 = arith.constant 0 : index
    %c0_16 = arith.constant 0 : index
    %34 = vector.load %arg9[%c0_15, %c0_16] : memref<32x256xf32, #tpu.memory_space<vmem>>, vector<32x256xf32>
    tpu.vector_store %arg9[%c0_15, %c0_16], %33 {strides = array<i32>} : memref<32x256xf32, #tpu.memory_space<vmem>>, vector<32x256xf32>,
    %c0_i32_17 = arith.constant 0 : i32
    %35 = arith.cmpi eq, %arg2, %c0_i32_17 : i32
    %36 = arith.extui %35 : i1 to i32
    %c0_i32_18 = arith.constant 0 : i32
    %37 = arith.cmpi ne, %36, %c0_i32_18 : i32
    scf.if %37 {
      %c0_19 = arith.constant 0 : index
      %c0_20 = arith.constant 0 : index
      %38 = vector.load %arg9[%c0_19, %c0_20] : memref<32x256xf32, #tpu.memory_space<vmem>>, vector<32x256xf32>
      %c0_21 = arith.constant 0 : index
      %c0_22 = arith.constant 0 : index
      %39 = vector.load %arg5[%c0_21, %c0_22] : memref<1x256xf32, #tpu.memory_space<vmem>>, vector<1x256xf32>
      %40 = vector.broadcast %39 : vector<1x256xf32> to vector<32x256xf32>
      %41 = arith.addf %38, %40 : vector<32x256xf32>
      %c0_23 = arith.constant 0 : index
      %c0_24 = arith.constant 0 : index
      %42 = vector.load %arg8[%c0_23, %c0_24] : memref<32x256xf32, #tpu.memory_space<vmem>>, vector<32x256xf32>
      tpu.vector_store %arg8[%c0_23, %c0_24], %41 {strides = array<i32>} : memref<32x256xf32, #tpu.memory_space<vmem>>, vector<32x256xf32>,
    } else {
    }
    return
  }
  func.func @transform_0(%arg0: i32, %arg1: i32, %arg2: i32) -> (i32, i32) {
    %c0_i32 = arith.constant 0 : i32
    return %arg0, %arg2 : i32, i32
  }
  func.func @transform_1(%arg0: i32, %arg1: i32, %arg2: i32) -> (i32, i32) {
    %c0_i32 = arith.constant 0 : i32
    return %arg2, %arg1 : i32, i32
  }
  func.func @transform_2(%arg0: i32, %arg1: i32, %arg2: i32) -> (i32, i32) {
    %c0_i32 = arith.constant 0 : i32
    %c0_i32_0 = arith.constant 0 : i32
    return %c0_i32, %arg1 : i32, i32
  }
  func.func @transform_3(%arg0: i32, %arg1: i32, %arg2: i32) -> (i32, i32) {
    %c0_i32 = arith.constant 0 : i32
    %c0_i32_0 = arith.constant 0 : i32
    return %c0_i32, %arg2 : i32, i32
  }
  func.func @transform_4(%arg0: i32, %arg1: i32, %arg2: i32) -> (i32, i32) {
    %c0_i32 = arith.constant 0 : i32
    %c0_i32_0 = arith.constant 0 : i32
    return %c0_i32, %arg2 : i32, i32
  }
  func.func @transform_5(%arg0: i32, %arg1: i32, %arg2: i32) -> (i32, i32) {
    %c0_i32 = arith.constant 0 : i32
    return %arg0, %arg1 : i32, i32
  }
}

</mosaic_0001>

<bundles_post_ra>
// kernel: decoder_lm_forward.13
= control target key start
LH: loop header
LB: loop body
LE: loop exit
PB: predicated region body
PF: predicated region fallthrough
CT: control target
= control target key end

     0   :  { %s370_s1 = inlined_call_operand.vmem [shape: bf16[128,128], index: 1, kind: input, shape index: {}]   ;;  %s371_s0 = inlined_call_operand.vmem [shape: bf16[32,128], index: 0, kind: input, shape index: {}]   ;;  %s372_s2 = inlined_call_operand.vmem [shape: f32[1,128], index: 2, kind: input, shape index: {}]   ;;  %s373_s3 = inlined_call_operand.vmem [shape: bf16[32,128], index: 3, kind: input, shape index: {}]   ;;  %s374_s4 = inlined_call_operand.vmem [shape: bf16[32,128], index: 4, kind: output, shape index: {}]  }
   0x1   :  { %v290_v0 = vld [vmem:[%s370_s1] sm:$0xff]   ;;  %v291_v1 = vld [vmem:[%s370_s1 + $0x8] sm:$0xff]   ;;  %v292_v2 = vld [vmem:[%s370_s1 + $0x10] sm:$0xff]  }
   0x2   :  { %270 = vmatprep.subr.bf16.mxu0 %v290_v0  ;;  %v293_v3 = vld [vmem:[%s370_s1 + $0x18] sm:$0xff]   ;;  %v298_v4 = vld [vmem:[%s371_s0] sm:$0xff]   ;;  %v295_v6 = vld [vmem:[%s370_s1 + $0x28] sm:$0xff]  }
   0x3   :  { %271 = vmatpush3.bf16.msra.mxu0 %v290_v0  ;;  %286 = vmatprep.mubr.bf16.mxu0 %v298_v4  ;;  %v294_v5 = vld [vmem:[%s370_s1 + $0x20] sm:$0xff]   ;;  %v296_v7 = vld [vmem:[%s370_s1 + $0x30] sm:$0xff]   ;;  %v297_v8 = vld [vmem:[%s370_s1 + $0x38] sm:$0xff]  }
   0x4   :  { %272 = vmatprep.subr.bf16.mxu0 %v291_v1  ;;  %v299_v9 = vld [vmem:[%s371_s0 + $0x8] sm:$0xff]   ;;  %v231_v10 = vld [vmem:[%s372_s2] ss:$0 sm:$0xff] }
   0x5   :  { %v258_v11 = vld [vmem:[%s373_s3 + $0x8] sm:$0xff]   ;;  %v241_v12 = vld [vmem:[%s373_s3] sm:$0xff]  }
   0x6   :  { %v246_v15 = vunpack.c.l.bf16 %v258_v11  ;;  %v247_v17 = vunpack.c.h.bf16 %v258_v11  ;;  %v242_v19 = vunpack.c.l.bf16 %v241_v12  ;;  %v243_v21 = vunpack.c.h.bf16 %v241_v12 }
   0x7   :  { %273 = vmatpush3.bf16.msra.mxu0 %v291_v1 }
   0x8   :  { %274 = vmatprep.subr.bf16.mxu0 %v292_v2 }
   0xb   :  { %275 = vmatpush3.bf16.msra.mxu0 %v292_v2 }
   0xc   :  { %276 = vmatprep.subr.bf16.mxu0 %v293_v3 }
   0xf   :  { %277 = vmatpush3.bf16.msra.mxu0 %v293_v3 }
  0x10   :  { %278 = vmatprep.subr.bf16.mxu0 %v294_v5 }
  0x13   :  { %279 = vmatpush3.bf16.msra.mxu0 %v294_v5 }
  0x14   :  { %280 = vmatprep.subr.bf16.mxu0 %v295_v6 }
  0x17   :  { %281 = vmatpush3.bf16.msra.mxu0 %v295_v6 }
  0x18   :  { %282 = vmatprep.subr.bf16.mxu0 %v296_v7 }
  0x1b   :  { %283 = vmatpush3.bf16.msra.mxu0 %v296_v7 }
  0x1c   :  { %284 = vmatprep.subr.bf16.mxu0 %v297_v8 }
  0x1f   :  { %285 = vmatpush3.bf16.msra.mxu0 %v297_v8 }
  0x22   :  { %287 = vmatmul.mubr.bf16.vlgmr.msra.gmra.mrb[0].mxu0 %v299_v9 }
  0xf5   :  { %v288_v13 = vpop.f32.mrb[0].mxu0 }
  0xf6   :  { %v183_v14 = vadd.f32 %v288_v13, %v231_v10  ;;  %v144_v16 = vpop.f32.mrb[1].mxu0 }
  0xf7   :  { %v181_v18 = vadd.f32 %v231_v10, %v144_v16  ;;  %v289_v20 = vpop.f32.mrb[2].mxu0 }
  0xf8   :  { %v184_v22 = vadd.f32 %v289_v20, %v231_v10  ;;  %v147_v23 = vpop.f32.mrb[3].mxu0  ;;  %v195_v25 = vadd.f32 %v246_v15, %v183_v14 }
  0xf9   :  { %v182_v24 = vadd.f32 %v231_v10, %v147_v23  ;;  %v193_v27 = vadd.f32 %v242_v19, %v181_v18 }
  0xfa   :  { %v196_v26 = vadd.f32 %v247_v17, %v184_v22 }
  0xfb   :  { %v194_v28 = vadd.f32 %v243_v21, %v182_v24 }
  0xfc   :  { %v256_v29 = vpack.c.bf16 %v196_v26, %v195_v25 }
  0xfd   :  { %v251_v30 = vpack.c.bf16 %v194_v28, %v193_v27 }
  0xfe   :  { %259 = vst [vmem:[%s374_s4 + $0x8] sm:$0xff] %v256_v29  }
  0xff   :  { %252 = vst [vmem:[%s374_s4] sm:$0xff] %v251_v30  }

// kernel: decoder_lm_forward.14
= control target key start
LH: loop header
LB: loop body
LE: loop exit
PB: predicated region body
PF: predicated region fallthrough
CT: control target
= control target key end

     0   :  { %v518_v35 = vmov 0   ;;  %s700_s0 = inlined_call_operand.vmem [shape: bf16[32,128], index: 0, kind: input, shape index: {}]   ;;  %s701_s1 = inlined_call_operand.vmem [shape: bf16[128,256], index: 1, kind: input, shape index: {}]   ;;  %s702_s3 = inlined_call_operand.vmem [shape: f32[1,128], index: 3, kind: input, shape index: {}]   ;;  %s703_s4 = inlined_call_operand.vmem [shape: f32[1,128], index: 4, kind: input, shape index: {}]   ;;  %s704_s2 = inlined_call_operand.vmem [shape: f32[1,256], index: 2, kind: input, shape index: {}]   ;;  %s705_s5 = inlined_call_operand.vmem [shape: bf16[32,256], index: 5, kind: output, shape index: {}]  }
   0x1   :  { %v445_v0 = vld [vmem:[%s700_s0] sm:$0xff]   ;;  %v452_v1 = vld [vmem:[%s700_s0 + $0x8] sm:$0xff]   ;;  %v473_v8 = vld [vmem:[%s701_s1 + $0x14] ss:$8 sps:$4 sm:$0xff]   ;;  %246 = vmatprep.mubr.bf16.mxu0 %v518_v35  ;;  %256 = vmatprep.mubr.bf16.mxu1 %v518_v35 }
   0x2   :  { %v446_v2 = vunpack.c.l.bf16 %v445_v0  ;;  %v450_v3 = vunpack.c.l.bf16 %v452_v1  ;;  %v447_v4 = vunpack.c.h.bf16 %v445_v0  ;;  %v451_v5 = vunpack.c.h.bf16 %v452_v1  ;;  %v470_v6 = vld [vmem:[%s701_s1 + $0x4] ss:$8 sps:$4 sm:$0xff]   ;;  %v472_v7 = vld [vmem:[%s701_s1] ss:$8 sps:$4 sm:$0xff]   ;;  %v475_v25 = vld [vmem:[%s701_s1 + $0x10] ss:$8 sps:$4 sm:$0xff]  }
   0x3   :  { %214 = vmatprep.subr.bf16.mxu0 %v470_v6  ;;  %453 = vmatprep.subr.bf16.mxu1 %v470_v6  ;;  %v476_v26 = vld [vmem:[%s701_s1 + $0x24] ss:$8 sps:$4 sm:$0xff]   ;;  %v478_v27 = vld [vmem:[%s701_s1 + $0x20] ss:$8 sps:$4 sm:$0xff]   ;;  %v479_v28 = vld [vmem:[%s701_s1 + $0x34] ss:$8 sps:$4 sm:$0xff]  }
   0x4   :  { %41 = vadd.xlane.f32.xlu0 %v446_v2  ;;  %45 = vadd.xlane.f32.xlu1 %v450_v3  ;;  %v481_v29 = vld [vmem:[%s701_s1 + $0x30] ss:$8 sps:$4 sm:$0xff]   ;;  %v482_v30 = vld [vmem:[%s701_s1 + $0x44] ss:$8 sps:$4 sm:$0xff]   ;;  %v484_v31 = vld [vmem:[%s701_s1 + $0x40] ss:$8 sps:$4 sm:$0xff]  }
   0x5   :  { %215 = vmatpush1.bf16.msra.mxu0 %v472_v7  ;;  %461 = vmatpush1.bf16.msra.mxu1 %v472_v7  ;;  %v485_v32 = vld [vmem:[%s701_s1 + $0x54] ss:$8 sps:$4 sm:$0xff]   ;;  %v487_v33 = vld [vmem:[%s701_s1 + $0x50] ss:$8 sps:$4 sm:$0xff]   ;;  %v488_v34 = vld [vmem:[%s701_s1 + $0x64] ss:$8 sps:$4 sm:$0xff]   ;;  %v296_v7 = vlaneseq }
   0x6   :  { %216 = vmatprep.subr.bf16.mxu0 %v473_v8  ;;  %454 = vmatprep.subr.bf16.mxu1 %v473_v8  ;;  %v490_v36 = vld [vmem:[%s701_s1 + $0x60] ss:$8 sps:$4 sm:$0xff]   ;;  %v491_v37 = vld [vmem:[%s701_s1 + $0x74] ss:$8 sps:$4 sm:$0xff]   ;;  %v493_v38 = vld [vmem:[%s701_s1 + $0x70] ss:$8 sps:$4 sm:$0xff]  }
   0x7   :  { %v418_v53 = vld [vmem:[%s702_s3] ss:$0 sm:$0xff]  ;;  %v297_v8 = vshrl.u32 %v296_v7, 7 }
   0x8   :  { %43 = vadd.xlane.f32.xlu0 %v447_v4  ;;  %47 = vadd.xlane.f32.xlu1 %v451_v5  ;;  %v419_v58 = vld [vmem:[%s703_s4] ss:$0 sm:$0xff] }
   0x9   :  { %217 = vmatpush1.bf16.msra.mxu0 %v475_v25  ;;  %462 = vmatpush1.bf16.msra.mxu1 %v475_v25 }
   0xa   :  { %218 = vmatprep.subr.bf16.mxu0 %v476_v26  ;;  %455 = vmatprep.subr.bf16.mxu1 %v476_v26 }
   0xd   :  { %219 = vmatpush1.bf16.msra.mxu0 %v478_v27  ;;  %463 = vmatpush1.bf16.msra.mxu1 %v478_v27 }
   0xe   :  { %220 = vmatprep.subr.bf16.mxu0 %v479_v28  ;;  %456 = vmatprep.subr.bf16.mxu1 %v479_v28 }
  0x11   :  { %221 = vmatpush1.bf16.msra.mxu0 %v481_v29  ;;  %464 = vmatpush1.bf16.msra.mxu1 %v481_v29 }
  0x12   :  { %222 = vmatprep.subr.bf16.mxu0 %v482_v30  ;;  %457 = vmatprep.subr.bf16.mxu1 %v482_v30 }
  0x15   :  { %223 = vmatpush1.bf16.msra.mxu0 %v484_v31  ;;  %465 = vmatpush1.bf16.msra.mxu1 %v484_v31 }
  0x16   :  { %224 = vmatprep.subr.bf16.mxu0 %v485_v32  ;;  %458 = vmatprep.subr.bf16.mxu1 %v485_v32 }
  0x19   :  { %225 = vmatpush1.bf16.msra.mxu0 %v487_v33  ;;  %466 = vmatpush1.bf16.msra.mxu1 %v487_v33 }
  0x1a   :  { %226 = vmatprep.subr.bf16.mxu0 %v488_v34  ;;  %459 = vmatprep.subr.bf16.mxu1 %v488_v34 }
  0x1d   :  { %227 = vmatpush1.bf16.msra.mxu0 %v490_v36  ;;  %467 = vmatpush1.bf16.msra.mxu1 %v490_v36 }
  0x1e   :  { %228 = vmatprep.subr.bf16.mxu0 %v491_v37  ;;  %460 = vmatprep.subr.bf16.mxu1 %v491_v37 }
  0x21   :  { %229 = vmatpush1.bf16.msra.mxu0 %v493_v38  ;;  %468 = vmatpush1.bf16.msra.mxu1 %v493_v38 }
  0x91   :  { %v42_v9 = vpop.xlane.xlu0 %41  ;;  %v46_v10 = vpop.xlane.xlu1 %45 }
  0x92   :  { %v50_v11 = vmul.f32 0.0078125, %v42_v9  ;;  %v52_v12 = vmul.f32 0.0078125, %v46_v10  ;;  %v298_v9 = vsub.s32 0, %v297_v8  ;;  %v294_v10 = vld [vmem:[%s704_s2] sm:$0x3] }
  0x94   :  { %v564_v13 = vsub.f32 %v446_v2, %v50_v11  ;;  %v566_v14 = vsub.f32 %v450_v3, %v52_v12  ;;  %v302_v11 = vsub.s32 1, %v297_v8  ;;  %v299_v12 = vrot.slane %v294_v10, %v298_v9 }
  0x95   :  { %v44_v15 = vpop.xlane.xlu0 %43  ;;  %v48_v16 = vpop.xlane.xlu1 %47 }
  0x96   :  { %v51_v17 = vmul.f32 0.0078125, %v44_v15  ;;  %v58_v18 = vmul.f32 %v564_v13, %v564_v13  ;;  %v53_v19 = vmul.f32 0.0078125, %v48_v16  ;;  %v60_v22 = vmul.f32 %v566_v14, %v566_v14 }
  0x98   :  { %v570_v20 = vsub.f32 %v447_v4, %v51_v17  ;;  %62 = vadd.xlane.f32.xlu0 %v58_v18  ;;  %v572_v21 = vsub.f32 %v451_v5, %v53_v19 }
  0x9a   :  { %v59_v23 = vmul.f32 %v570_v20, %v570_v20  ;;  %v61_v24 = vmul.f32 %v572_v21, %v572_v21 }
  0x9c   :  { %66 = vadd.xlane.f32.xlu0 %v60_v22  ;;  %64 = vadd.xlane.f32.xlu1 %v59_v23 }
  0xa0   :  { %68 = vadd.xlane.f32.xlu1 %v61_v24 }
 0x125   :  { %v63_v39 = vpop.xlane.xlu0 %62 }
 0x126   :  { %v70_v40 = vmul.f32 0.0078125, %v63_v39 }
 0x128   :  { %v74_v41 = vadd.f32 1e-05, %v70_v40 }
 0x129   :  { %v65_v42 = vpop.xlane.xlu1 %64  ;;  %v67_v43 = vpop.xlane.xlu0 %66 }
 0x12a   :  { %494 = vrsqrt.f32 %v74_v41  ;;  %v71_v44 = vmul.f32 0.0078125, %v65_v42  ;;  %v72_v45 = vmul.f32 0.0078125, %v67_v43 }
 0x12c   :  { %v75_v46 = vadd.f32 1e-05, %v71_v44  ;;  %v76_v47 = vadd.f32 1e-05, %v72_v45 }
 0x12d   :  { %v69_v48 = vpop.xlane.xlu1 %68 }
 0x12e   :  { %496 = vrsqrt.f32 %v75_v46  ;;  %v73_v49 = vmul.f32 0.0078125, %v69_v48 }
 0x12f   :  { %498 = vrsqrt.f32 %v76_v47 }
 0x130   :  { %v77_v50 = vadd.f32 1e-05, %v73_v49 }
 0x132   :  { %500 = vrsqrt.f32 %v77_v50 }
 0x134   :  { %v495_v51 = vpop.eup %494 }
 0x135   :  { %v82_v52 = vmul.f32 %v495_v51, %v564_v13  ;;  %v303_v13 = vrot.slane %v294_v10, %v302_v11 }
 0x137   :  { %v93_v57 = vmul.f32 %v418_v53, %v82_v52 }
 0x138   :  { %v497_v54 = vpop.eup %496 }
 0x139   :  { %v499_v55 = vpop.eup %498  ;;  %v83_v56 = vmul.f32 %v497_v54, %v570_v20  ;;  %v104_v62 = vadd.f32 %v419_v58, %v93_v57 }
 0x13a   :  { %v84_v59 = vmul.f32 %v499_v55, %v566_v14 }
 0x13b   :  { %v94_v60 = vmul.f32 %v418_v53, %v83_v56 }
 0x13c   :  { %v501_v61 = vpop.eup %500  ;;  %v95_v1 = vmul.f32 %v418_v53, %v84_v59 }
 0x13d   :  { %v105_v63 = vadd.f32 %v419_v58, %v94_v60  ;;  %v85_v0 = vmul.f32 %v501_v61, %v572_v21 }
 0x13e   :  { %v106_v4 = vadd.f32 %v419_v58, %v95_v1 }
 0x13f   :  { %v116_v2 = vpack.c.bf16 %v105_v63, %v104_v62  ;;  %v96_v3 = vmul.f32 %v418_v53, %v85_v0 }
 0x141   :  { %247 = vmatmul.mubr.bf16.vlgmr.msra.gmra.mrb[0].mxu0 %v116_v2  ;;  %v107_v5 = vadd.f32 %v419_v58, %v96_v3 }
 0x143   :  { %v117_v6 = vpack.c.bf16 %v107_v5, %v106_v4 }
 0x145   :  { %257 = vmatmul.mubr.bf16.vlgmr.msra.gmra.mrb[0].mxu1 %v117_v6 }
 0x214   :  { %v248_v14 = vpop.f32.mrb[0].mxu0 }
 0x215   :  { %v632_v15 = vadd.f32 %v299_v12, %v248_v14  ;;  %v250_v16 = vpop.f32.mrb[1].mxu0 }
 0x216   :  { %v634_v17 = vadd.f32 %v303_v13, %v250_v16  ;;  %v252_v18 = vpop.f32.mrb[2].mxu0 }
 0x217   :  { %v314_v19 = vmul.f32 %v632_v15, %v632_v15  ;;  %v638_v20 = vadd.f32 %v299_v12, %v252_v18  ;;  %v254_v21 = vpop.f32.mrb[3].mxu0 }
 0x218   :  { %v315_v22 = vmul.f32 %v634_v17, %v634_v17  ;;  %v642_v23 = vadd.f32 %v303_v13, %v254_v21  ;;  %v258_v24 = vpop.f32.mrb[0].mxu1 }
 0x219   :  { %v322_v25 = vmul.f32 %v314_v19, %v632_v15  ;;  %v316_v26 = vmul.f32 %v638_v20, %v638_v20  ;;  %v647_v27 = vadd.f32 %v299_v12, %v258_v24  ;;  %v260_v28 = vpop.f32.mrb[1].mxu1 }
 0x21a   :  { %v323_v29 = vmul.f32 %v315_v22, %v634_v17  ;;  %v317_v30 = vmul.f32 %v642_v23, %v642_v23  ;;  %v652_v31 = vadd.f32 %v303_v13, %v260_v28  ;;  %v262_v32 = vpop.f32.mrb[2].mxu1 }
 0x21b   :  { %v330_v33 = vmul.f32 0.044715, %v322_v25  ;;  %v324_v34 = vmul.f32 %v316_v26, %v638_v20  ;;  %v318_v35 = vmul.f32 %v647_v27, %v647_v27  ;;  %v657_v36 = vadd.f32 %v299_v12, %v262_v32  ;;  %v264_v37 = vpop.f32.mrb[3].mxu1 }
 0x21c   :  { %v331_v38 = vmul.f32 0.044715, %v323_v29  ;;  %v325_v39 = vmul.f32 %v317_v30, %v642_v23  ;;  %v319_v40 = vmul.f32 %v652_v31, %v652_v31  ;;  %v662_v41 = vadd.f32 %v303_v13, %v264_v37 }
 0x21d   :  { %v338_v42 = vadd.f32 %v330_v33, %v632_v15  ;;  %v332_v43 = vmul.f32 0.044715, %v324_v34  ;;  %v326_v44 = vmul.f32 %v318_v35, %v647_v27  ;;  %v320_v45 = vmul.f32 %v657_v36, %v657_v36 }
 0x21e   :  { %v339_v46 = vadd.f32 %v331_v38, %v634_v17  ;;  %v333_v47 = vmul.f32 0.044715, %v325_v39  ;;  %v327_v48 = vmul.f32 %v319_v40, %v652_v31  ;;  %v321_v49 = vmul.f32 %v662_v41, %v662_v41 }
 0x21f   :  { %v346_v50 = vmul.f32 0.7978846, %v338_v42  ;;  %v340_v51 = vadd.f32 %v332_v43, %v638_v20  ;;  %v334_v52 = vmul.f32 0.044715, %v326_v44  ;;  %v328_v53 = vmul.f32 %v320_v45, %v657_v36 }
 0x220   :  { %v347_v54 = vmul.f32 0.7978846, %v339_v46  ;;  %v341_v55 = vadd.f32 %v333_v47, %v642_v23  ;;  %v335_v56 = vmul.f32 0.044715, %v327_v48  ;;  %v329_v57 = vmul.f32 %v321_v49, %v662_v41 }
 0x221   :  { %502 = vtanh.f32 %v346_v50  ;;  %v348_v58 = vmul.f32 0.7978846, %v340_v51  ;;  %v342_v59 = vadd.f32 %v334_v52, %v647_v27  ;;  %v336_v60 = vmul.f32 0.044715, %v328_v53 }
 0x222   :  { %504 = vtanh.f32 %v347_v54  ;;  %v349_v61 = vmul.f32 0.7978846, %v341_v55  ;;  %v343_v62 = vadd.f32 %v335_v56, %v652_v31  ;;  %v337_v63 = vmul.f32 0.044715, %v329_v57 }
 0x223   :  { %506 = vtanh.f32 %v348_v58  ;;  %v350_v0 = vmul.f32 0.7978846, %v342_v59  ;;  %v344_v1 = vadd.f32 %v336_v60, %v657_v36 }
 0x224   :  { %508 = vtanh.f32 %v349_v61  ;;  %v351_v2 = vmul.f32 0.7978846, %v343_v62  ;;  %v345_v3 = vadd.f32 %v337_v63, %v662_v41 }
 0x225   :  { %510 = vtanh.f32 %v350_v0  ;;  %v352_v4 = vmul.f32 0.7978846, %v344_v1 }
 0x226   :  { %512 = vtanh.f32 %v351_v2  ;;  %v353_v5 = vmul.f32 0.7978846, %v345_v3 }
 0x227   :  { %514 = vtanh.f32 %v352_v4 }
 0x228   :  { %516 = vtanh.f32 %v353_v5 }
 0x22b   :  { %v503_v6 = vpop.eup %502 }
 0x22c   :  { %v505_v7 = vpop.eup %504  ;;  %v362_v8 = vadd.f32 1.0, %v503_v6 }
 0x22d   :  { %v507_v9 = vpop.eup %506  ;;  %v363_v10 = vadd.f32 1.0, %v505_v7 }
 0x22e   :  { %v509_v11 = vpop.eup %508  ;;  %v370_v12 = vmul.f32 0.5, %v362_v8  ;;  %v364_v13 = vadd.f32 1.0, %v507_v9 }
 0x22f   :  { %v511_v14 = vpop.eup %510  ;;  %v371_v16 = vmul.f32 0.5, %v363_v10  ;;  %v365_v18 = vadd.f32 1.0, %v509_v11 }
 0x230   :  { %v513_v19 = vpop.eup %512  ;;  %v378_v21 = vmul.f32 %v370_v12, %v632_v15  ;;  %v372_v22 = vmul.f32 0.5, %v364_v13  ;;  %v366_v24 = vadd.f32 1.0, %v511_v14 }
 0x231   :  { %v515_v25 = vpop.eup %514  ;;  %v379_v26 = vmul.f32 %v371_v16, %v634_v17  ;;  %v373_v28 = vmul.f32 0.5, %v365_v18  ;;  %v367_v29 = vadd.f32 1.0, %v513_v19 }
 0x232   :  { %v517_v30 = vpop.eup %516  ;;  %v380_v32 = vmul.f32 %v372_v22, %v638_v20  ;;  %v374_v33 = vmul.f32 0.5, %v366_v24  ;;  %v368_v34 = vadd.f32 1.0, %v515_v25 }
 0x233   :  { %v440_v35 = vpack.c.bf16 %v379_v26, %v378_v21  ;;  %v381_v37 = vmul.f32 %v373_v28, %v642_v23  ;;  %v375_v38 = vmul.f32 0.5, %v367_v29  ;;  %v369_v39 = vadd.f32 1.0, %v517_v30 }
 0x234   :  { %v382_v40 = vmul.f32 %v374_v33, %v647_v27  ;;  %v376_v15 = vmul.f32 0.5, %v368_v34 }
 0x235   :  { %410 = vst [vmem:[%s705_s5] sm:$0xff] %v440_v35  ;;  %v441_v17 = vpack.c.bf16 %v381_v37, %v380_v32  ;;  %v383_v42 = vmul.f32 %v375_v38, %v652_v31  ;;  %v377_v43 = vmul.f32 0.5, %v369_v39 }
 0x236   :  { %v384_v20 = vmul.f32 %v376_v15, %v657_v36 }
 0x237   :  { %411 = vst [vmem:[%s705_s5 + $0x8] sm:$0xff] %v441_v17  ;;  %v442_v23 = vpack.c.bf16 %v383_v42, %v382_v40  ;;  %v385_v44 = vmul.f32 %v377_v43, %v662_v41 }
 0x239   :  { %412 = vst [vmem:[%s705_s5 + $0x10] sm:$0xff] %v442_v23  ;;  %v443_v27 = vpack.c.bf16 %v385_v44, %v384_v20 }
 0x23b   :  { %413 = vst [vmem:[%s705_s5 + $0x18] sm:$0xff] %v443_v27 }

// kernel: decoder_lm_forward.11
= control target key start
LH: loop header
LB: loop body
LE: loop exit
PB: predicated region body
PF: predicated region fallthrough
CT: control target
= control target key end

     0   :  { %v630_v41 = vmov 0   ;;  %s792_s0 = inlined_call_operand.vmem [shape: bf16[32,128], index: 0, kind: input, shape index: {}]   ;;  %s793_s1 = inlined_call_operand.vmem [shape: bf16[128,384], index: 1, kind: input, shape index: {}]   ;;  %s794_s3 = inlined_call_operand.vmem [shape: f32[1,128], index: 3, kind: input, shape index: {}]   ;;  %s795_s4 = inlined_call_operand.vmem [shape: f32[1,128], index: 4, kind: input, shape index: {}]   ;;  %s796_s2 = inlined_call_operand.vmem [shape: f32[1,384], index: 2, kind: input, shape index: {}]   ;;  %s797_s5 = inlined_call_operand.vmem [shape: bf16[32,384], index: 5, kind: output, shape index: {}]  }
   0x1   :  { %v551_v0 = vld [vmem:[%s792_s0] sm:$0xff]   ;;  %v558_v1 = vld [vmem:[%s792_s0 + $0x8] sm:$0xff]   ;;  %v600_v29 = vld [vmem:[%s793_s1 + $0x30] ss:$12 sps:$4 sm:$0xff]   ;;  %318 = vmatprep.mubr.bf16.mxu0 %v630_v41 }
   0x2   :  { %v552_v2 = vunpack.c.l.bf16 %v551_v0  ;;  %v556_v3 = vunpack.c.l.bf16 %v558_v1  ;;  %v553_v4 = vunpack.c.h.bf16 %v551_v0  ;;  %v557_v5 = vunpack.c.h.bf16 %v558_v1  ;;  %v590_v6 = vld [vmem:[%s793_s1 + $0x4] ss:$12 sps:$4 sm:$0xff]   ;;  %v592_v7 = vld [vmem:[%s793_s1] ss:$12 sps:$4 sm:$0xff]   ;;  %v593_v8 = vld [vmem:[%s793_s1 + $0x1c] ss:$12 sps:$4 sm:$0xff]  }
   0x3   :  { %286 = vmatprep.subr.bf16.mxu0 %v590_v6  ;;  %v595_v9 = vld [vmem:[%s793_s1 + $0x8] ss:$12 sps:$4 sm:$0xff]   ;;  %v596_v26 = vld [vmem:[%s793_s1 + $0x18] ss:$12 sps:$4 sm:$0xff]   ;;  %v599_v28 = vld [vmem:[%s793_s1 + $0x20] ss:$12 sps:$4 sm:$0xff]  }
   0x4   :  { %45 = vadd.xlane.f32.xlu0 %v552_v2  ;;  %49 = vadd.xlane.f32.xlu1 %v556_v3  ;;  %v597_v27 = vld [vmem:[%s793_s1 + $0x34] ss:$12 sps:$4 sm:$0xff]   ;;  %v601_v30 = vld [vmem:[%s793_s1 + $0x4c] ss:$12 sps:$4 sm:$0xff]   ;;  %v605_v33 = vld [vmem:[%s793_s1 + $0x64] ss:$12 sps:$4 sm:$0xff]  }
   0x5   :  { %287 = vmatpush1.bf16.msra.mxu0 %v592_v7  ;;  %569 = vmatprep.subr.bf16.mxu1 %v595_v9  ;;  %v603_v31 = vld [vmem:[%s793_s1 + $0x38] ss:$12 sps:$4 sm:$0xff]   ;;  %v604_v32 = vld [vmem:[%s793_s1 + $0x48] ss:$12 sps:$4 sm:$0xff]   ;;  %v607_v34 = vld [vmem:[%s793_s1 + $0x50] ss:$12 sps:$4 sm:$0xff]  }
   0x6   :  { %288 = vmatprep.subr.bf16.mxu0 %v593_v8  ;;  %570 = vmatpush3.bf16.msra.mxu1 %v595_v9  ;;  %v608_v35 = vld [vmem:[%s793_s1 + $0x60] ss:$12 sps:$4 sm:$0xff]   ;;  %v609_v36 = vld [vmem:[%s793_s1 + $0x7c] ss:$12 sps:$4 sm:$0xff]   ;;  %v612_v38 = vld [vmem:[%s793_s1 + $0x78] ss:$12 sps:$4 sm:$0xff]  }
   0x7   :  { %571 = vmatprep.subr.bf16.mxu1 %v599_v28  ;;  %v611_v37 = vld [vmem:[%s793_s1 + $0x68] ss:$12 sps:$4 sm:$0xff]   ;;  %v615_v40 = vld [vmem:[%s793_s1 + $0x80] ss:$12 sps:$4 sm:$0xff]   ;;  %v616_v42 = vld [vmem:[%s793_s1 + $0x90] ss:$12 sps:$4 sm:$0xff]  }
   0x8   :  { %47 = vadd.xlane.f32.xlu0 %v553_v4  ;;  %51 = vadd.xlane.f32.xlu1 %v557_v5  ;;  %v613_v39 = vld [vmem:[%s793_s1 + $0x94] ss:$12 sps:$4 sm:$0xff]   ;;  %v617_v43 = vld [vmem:[%s793_s1 + $0xac] ss:$12 sps:$4 sm:$0xff]   ;;  %v621_v46 = vld [vmem:[%s793_s1 + $0xb0] ss:$12 sps:$4 sm:$0xff]  }
   0x9   :  { %289 = vmatpush1.bf16.msra.mxu0 %v596_v26  ;;  %v619_v44 = vld [vmem:[%s793_s1 + $0x98] ss:$12 sps:$4 sm:$0xff]   ;;  %v620_v45 = vld [vmem:[%s793_s1 + $0xa8] ss:$12 sps:$4 sm:$0xff]   ;;  %v508_v61 = vld [vmem:[%s794_s3] ss:$0 sm:$0xff] }
   0xa   :  { %290 = vmatprep.subr.bf16.mxu0 %v597_v27  ;;  %572 = vmatpush3.bf16.msra.mxu1 %v599_v28 }
   0xb   :  { %573 = vmatprep.subr.bf16.mxu1 %v603_v31 }
   0xd   :  { %291 = vmatpush1.bf16.msra.mxu0 %v600_v29 }
   0xe   :  { %292 = vmatprep.subr.bf16.mxu0 %v601_v30  ;;  %574 = vmatpush3.bf16.msra.mxu1 %v603_v31 }
   0xf   :  { %575 = vmatprep.subr.bf16.mxu1 %v607_v34 }
  0x11   :  { %293 = vmatpush1.bf16.msra.mxu0 %v604_v32 }
  0x12   :  { %294 = vmatprep.subr.bf16.mxu0 %v605_v33  ;;  %576 = vmatpush3.bf16.msra.mxu1 %v607_v34 }
  0x13   :  { %577 = vmatprep.subr.bf16.mxu1 %v611_v37 }
  0x15   :  { %295 = vmatpush1.bf16.msra.mxu0 %v608_v35 }
  0x16   :  { %296 = vmatprep.subr.bf16.mxu0 %v609_v36  ;;  %578 = vmatpush3.bf16.msra.mxu1 %v611_v37 }
  0x17   :  { %579 = vmatprep.subr.bf16.mxu1 %v615_v40 }
  0x19   :  { %297 = vmatpush1.bf16.msra.mxu0 %v612_v38 }
  0x1a   :  { %298 = vmatprep.subr.bf16.mxu0 %v613_v39  ;;  %580 = vmatpush3.bf16.msra.mxu1 %v615_v40 }
  0x1b   :  { %581 = vmatprep.subr.bf16.mxu1 %v619_v44 }
  0x1d   :  { %299 = vmatpush1.bf16.msra.mxu0 %v616_v42 }
  0x1e   :  { %300 = vmatprep.subr.bf16.mxu0 %v617_v43  ;;  %582 = vmatpush3.bf16.msra.mxu1 %v619_v44 }
  0x1f   :  { %583 = vmatprep.subr.bf16.mxu1 %v621_v46 }
  0x21   :  { %301 = vmatpush1.bf16.msra.mxu0 %v620_v45 }
  0x22   :  { %584 = vmatpush3.bf16.msra.mxu1 %v621_v46 }
  0x91   :  { %v46_v10 = vpop.xlane.xlu0 %45  ;;  %v50_v11 = vpop.xlane.xlu1 %49 }
  0x92   :  { %v54_v12 = vmul.f32 0.0078125, %v46_v10  ;;  %v56_v13 = vmul.f32 0.0078125, %v50_v11 }
  0x94   :  { %v679_v14 = vsub.f32 %v552_v2, %v54_v12  ;;  %v681_v15 = vsub.f32 %v556_v3, %v56_v13  ;;  %v509_v2 = vld [vmem:[%s795_s4] ss:$0 sm:$0xff] }
  0x95   :  { %v48_v16 = vpop.xlane.xlu0 %47  ;;  %v52_v17 = vpop.xlane.xlu1 %51 }
  0x96   :  { %v55_v18 = vmul.f32 0.0078125, %v48_v16  ;;  %v62_v19 = vmul.f32 %v679_v14, %v679_v14  ;;  %v57_v20 = vmul.f32 0.0078125, %v52_v17  ;;  %v64_v23 = vmul.f32 %v681_v15, %v681_v15 }
  0x97   :  { %v429_v16 = vlaneseq }
  0x98   :  { %v685_v21 = vsub.f32 %v553_v4, %v55_v18  ;;  %66 = vadd.xlane.f32.xlu0 %v62_v19  ;;  %v687_v22 = vsub.f32 %v557_v5, %v57_v20  ;;  %v427_v18 = vld [vmem:[%s796_s2] sm:$0x7] }
  0x99   :  { %v430_v17 = vshrl.u32 %v429_v16, 7 }
  0x9a   :  { %v63_v24 = vmul.f32 %v685_v21, %v685_v21  ;;  %v65_v25 = vmul.f32 %v687_v22, %v687_v22 }
  0x9b   :  { %v435_v19 = vsub.s32 1, %v430_v17 }
  0x9c   :  { %70 = vadd.xlane.f32.xlu0 %v64_v23  ;;  %68 = vadd.xlane.f32.xlu1 %v63_v24 }
  0xa0   :  { %72 = vadd.xlane.f32.xlu1 %v65_v25 }
 0x125   :  { %v67_v47 = vpop.xlane.xlu0 %66 }
 0x126   :  { %v74_v48 = vmul.f32 0.0078125, %v67_v47 }
 0x128   :  { %v78_v49 = vadd.f32 1e-05, %v74_v48 }
 0x129   :  { %v69_v50 = vpop.xlane.xlu1 %68  ;;  %v71_v51 = vpop.xlane.xlu0 %70 }
 0x12a   :  { %622 = vrsqrt.f32 %v78_v49  ;;  %v75_v52 = vmul.f32 0.0078125, %v69_v50  ;;  %v76_v53 = vmul.f32 0.0078125, %v71_v51 }
 0x12c   :  { %v79_v54 = vadd.f32 1e-05, %v75_v52  ;;  %v80_v55 = vadd.f32 1e-05, %v76_v53 }
 0x12d   :  { %v73_v56 = vpop.xlane.xlu1 %72 }
 0x12e   :  { %624 = vrsqrt.f32 %v79_v54  ;;  %v77_v57 = vmul.f32 0.0078125, %v73_v56 }
 0x12f   :  { %626 = vrsqrt.f32 %v80_v55 }
 0x130   :  { %v81_v58 = vadd.f32 1e-05, %v77_v57 }
 0x132   :  { %628 = vrsqrt.f32 %v81_v58 }
 0x134   :  { %v623_v59 = vpop.eup %622 }
 0x135   :  { %v86_v60 = vmul.f32 %v623_v59, %v679_v14 }
 0x137   :  { %v97_v1 = vmul.f32 %v508_v61, %v86_v60 }
 0x138   :  { %v625_v62 = vpop.eup %624 }
 0x139   :  { %v627_v63 = vpop.eup %626  ;;  %v87_v0 = vmul.f32 %v625_v62, %v685_v21  ;;  %v108_v6 = vadd.f32 %v509_v2, %v97_v1  ;;  %v439_v21 = vsub.s32 2, %v430_v17 }
 0x13a   :  { %v88_v3 = vmul.f32 %v627_v63, %v681_v15  ;;  %v431_v15 = vsub.s32 0, %v430_v17 }
 0x13b   :  { %v98_v4 = vmul.f32 %v508_v61, %v87_v0  ;;  %v440_v26 = vrot.slane %v427_v18, %v439_v21 }
 0x13c   :  { %v629_v5 = vpop.eup %628  ;;  %v99_v9 = vmul.f32 %v508_v61, %v88_v3  ;;  %v432_v20 = vrot.slane %v427_v18, %v431_v15 }
 0x13d   :  { %v109_v7 = vadd.f32 %v509_v2, %v98_v4  ;;  %v89_v8 = vmul.f32 %v629_v5, %v687_v22  ;;  %v436_v22 = vrot.slane %v427_v18, %v435_v19 }
 0x13e   :  { %v110_v12 = vadd.f32 %v509_v2, %v99_v9 }
 0x13f   :  { %v124_v10 = vpack.c.bf16 %v109_v7, %v108_v6  ;;  %v100_v11 = vmul.f32 %v508_v61, %v89_v8 }
 0x141   :  { %319 = vmatmul.mubr.bf16.vlgmr.msra.gmra.mrb[0].mxu0 %v124_v10  ;;  %585 = vmatprep.mubr.bf16.mxu1 %v124_v10  ;;  %v111_v13 = vadd.f32 %v509_v2, %v100_v11 }
 0x142   :  { %328 = vmatprep.mubr.bf16.mxu0 %v630_v41 }
 0x143   :  { %v125_v14 = vpack.c.bf16 %v111_v13, %v110_v12 }
 0x145   :  { %586 = vmatmul.mubr.bf16.vlgmr.msra.gmra.mrb[0].mxu1 %v125_v14 }
 0x149   :  { %329 = vmatmul.mubr.bf16.gmra.mrb[4].mxu0 %v125_v14 }
 0x214   :  { %v320_v23 = vpop.f32.mrb[0].mxu0 }
 0x215   :  { %v444_v24 = vadd.f32 %v432_v20, %v320_v23  ;;  %v322_v25 = vpop.f32.mrb[1].mxu0 }
 0x216   :  { %v445_v27 = vadd.f32 %v436_v22, %v322_v25  ;;  %v324_v28 = vpop.f32.mrb[2].mxu0 }
 0x217   :  { %v447_v29 = vadd.f32 %v432_v20, %v324_v28  ;;  %v326_v30 = vpop.f32.mrb[3].mxu0 }
 0x218   :  { %v542_v31 = vpack.c.bf16 %v445_v27, %v444_v24  ;;  %v448_v32 = vadd.f32 %v436_v22, %v326_v30  ;;  %v587_v33 = vpop.f32.mrb[0].mxu1 }
 0x219   :  { %v452_v34 = vadd.f32 %v587_v33, %v440_v26  ;;  %v373_v35 = vpop.f32.mrb[1].mxu1 }
 0x21a   :  { %496 = vst [vmem:[%s797_s5] sm:$0xff] %v542_v31  ;;  %v544_v36 = vpack.c.bf16 %v448_v32, %v447_v29  ;;  %v446_v37 = vadd.f32 %v440_v26, %v373_v35  ;;  %v588_v38 = vpop.f32.mrb[2].mxu1 }
 0x21b   :  { %v547_v39 = vpack.c.bf16 %v452_v34, %v452_v34  ;;  %v455_v40 = vadd.f32 %v588_v38, %v440_v26  ;;  %v376_v41 = vpop.f32.mrb[3].mxu1 }
 0x21c   :  { %498 = vst [vmem:[%s797_s5 + $0xc] sm:$0xff] %v544_v36  ;;  %v543_v42 = vpack.c.bf16 %v446_v37, %v446_v37  ;;  %v449_v43 = vadd.f32 %v440_v26, %v376_v41  ;;  %v330_v44 = vpop.f32.mrb[4].mxu0 }
 0x21d   :  { %501 = vst [vmem:[%s797_s5 + $0x20] sm:$0xf] %v547_v39  ;;  %v549_v45 = vpack.c.bf16 %v455_v40, %v455_v40  ;;  %v450_v46 = vadd.f32 %v432_v20, %v330_v44  ;;  %v332_v47 = vpop.f32.mrb[5].mxu0 }
 0x21e   :  { %497 = vst [vmem:[%s797_s5 + $0x8] sm:$0xf] %v543_v42  ;;  %v545_v48 = vpack.c.bf16 %v449_v43, %v449_v43  ;;  %v451_v49 = vadd.f32 %v436_v22, %v332_v47  ;;  %v334_v50 = vpop.f32.mrb[6].mxu0 }
 0x21f   :  { %503 = vst [vmem:[%s797_s5 + $0x2c] sm:$0xf] %v549_v45  ;;  %v453_v51 = vadd.f32 %v432_v20, %v334_v50  ;;  %v336_v52 = vpop.f32.mrb[7].mxu0 }
 0x220   :  { %499 = vst [vmem:[%s797_s5 + $0x14] sm:$0xf] %v545_v48  ;;  %v546_v53 = vpack.c.bf16 %v451_v49, %v450_v46  ;;  %v454_v54 = vadd.f32 %v436_v22, %v336_v52 }
 0x222   :  { %500 = vst [vmem:[%s797_s5 + $0x18] sm:$0xff] %v546_v53  ;;  %v548_v55 = vpack.c.bf16 %v454_v54, %v453_v51 }
 0x224   :  { %502 = vst [vmem:[%s797_s5 + $0x24] sm:$0xff] %v548_v55 }

// kernel: decoder_lm_forward.12
= control target key start
LH: loop header
LB: loop body
LE: loop exit
PB: predicated region body
PF: predicated region fallthrough
CT: control target
= control target key end

     0   :  { %s1300_s12 = smov 0   ;;  %s1615_s0 = inlined_call_operand.vmem [shape: bf16[2,16,384], index: 0, kind: input, shape index: {}]   ;;  %s1616_s1 = inlined_call_operand.vmem [shape: f32[16,32], index: 1, kind: input, shape index: {}]   ;;  %s1617_s2 = inlined_call_operand.vmem [shape: f32[16,32], index: 2, kind: input, shape index: {}]   ;;  %s1618_s3 = inlined_call_operand.vmem [shape: bf16[2,16,128], index: 3, kind: output, shape index: {}]  }
   0x1 LB: > { %s1064_s13 = sadd.s32 4294967295, %s1269_s12   ;;  %p1068_p0 = scmp.ge.s32.totalorder %s1269_s12, 1  ;;  %s1269_s12 = sphi %s1300_s12, %s13_s12  }
   0x2   : > { %p137_p1 = scmp.lt.s32.totalorder %s1269_s12, 3 }
   0x4   : > { %p138_p2 = pnand %p1068_p0, %p137_p1 }
   0x5   : > { %p161_p3 = scmp.lt.s32.totalorder (!%p138_p2), %s1064_s13, 1  ;;  %s1271_s18 = smov (!%p138_p2), 16   ;;  %v1273_v12 = vmov (!%p138_p2), 0.0   ;;  %vm1274_vm0 = vmmov (!%p138_p2), 0   ;;  %v1355_v15 = vld [vmem:[%s1616_s1] sm:$0xff] (!%p138_p2)  ;;  %v1363_v16 = vld [vmem:[%s1616_s1 + $0x8] sm:$0xff] (!%p138_p2) }
   0x6   : > { %141 = sbr.rel (%p138_p2) target bundleno = 1316 (0x524), region = 32  ;;  %s1272_s19 = smov (!%p138_p2), 112   ;;  %1109 = vmatprep.subr.bf16.mxu0 (!%p138_p2), %v1273_v12  ;;  %1115 = vmatprep.subr.bf16.mxu1 (!%p138_p2), %v1273_v12  ;;  %vm217_vm1 = vcmask (!%p138_p2), 130048   ;;  %v1380_v20 = vld [vmem:[%s1617_s2] sm:$0xff] (!%p138_p2)  ;;  %v1386_v23 = vld [vmem:[%s1617_s2 + $0x8] sm:$0xff] (!%p138_p2)  ;;  %vm254_vm2 = vcmask (!%p138_p2), 261120  }
   0x7   : > { %1111 = vmatprep.mubr.msk.bf16.mxu0 (!%p138_p2), %vm1274_vm0, %v1273_v12  ;;  %1117 = vmatprep.mubr.msk.bf16.mxu1 (!%p138_p2), %vm1274_vm0, %v1273_v12  ;;  %s1275_s20 = smov (!%p138_p2), 80   ;;  %s1276_s21 = smov (!%p138_p2), 48   ;;  %vm993_vm5 = vcmask (!%p138_p2), 523264   ;;  %vm996_vm6 = vcmask (!%p138_p2), 785408  }
   0x8   : > { %s1277_s22 = smov (!%p138_p2), 96   ;;  %s1278_s23 = smov (!%p138_p2), 64  }
   0x9   : > { %s1279_s26 = smov (!%p138_p2), 32  }
   0xd   : > { %s1620_s13 = smov (!%p161_p3, %s1064_s13), 1 }
   0xe   : > { %s1157_s14 = smul.u32 24, %s1620_s13  ;;  %s1085_s6 = sshll.u32 %s1620_s13, 3 }
   0xf   : > { %s170_s9 = scalar_lea.vmem %s1618_s3, %s1085_s6 }
  0x10   : > { %s1314_s17 = scalar_lea.vmem %s1615_s0, %s1157_s14 }
  0x11   : > { %v172_v0 = vld [vmem:[%s1314_s17] sm:$0xff]  ;;  %v174_v1 = vld [vmem:[%s1314_s17 + $0xc] sm:$0xff] }
  0x12   : > { %v191_v2 = vrot.slane %v172_v0, 4  ;;  %v192_v3 = vrot.slane %v174_v1, 4  ;;  %v1322_v6 = vunpack.c.l.bf16 %v172_v0  ;;  %v1327_v9 = vunpack.c.l.bf16 %v174_v1 }
  0x14   : > { %v1318_v4 = vunpack.c.l.bf16 %v191_v2  ;;  %v1320_v5 = vunpack.c.l.bf16 %v192_v3  ;;  %v199_v11 = vsub.f32 0.0, %v1322_v6  ;;  %v200_v13 = vsub.f32 0.0, %v1327_v9 }
  0x15   : > { %v1180_v14 = vpack.i.bf16 %v1327_v9, %v1322_v6  ;;  %v198_v37 = vmul.f32 %v1327_v9, %v1363_v16  ;;  %v197_v38 = vmul.f32 %v1322_v6, %v1355_v15 }
  0x16   : > { %v1175_v7 = vpack.i.bf16 %v1320_v5, %v1318_v4  ;;  %v226_v8 = vsub.f32 0.0, %v1318_v4  ;;  %v227_v10 = vsub.f32 0.0, %v1320_v5  ;;  %v224_v27 = vmul.f32 %v1318_v4, %v1355_v15 }
  0x17   : > { %v225_v28 = vmul.f32 %v1320_v5, %v1363_v16 }
  0x18   : > { %1176 = vrot.lane.b32.xlu1 %v1175_v7, %s1271_s18  ;;  %230 = vrot.lane.b32.xlu0 %v226_v8, %s1272_s19 }
  0x1c   : > { %232 = vrot.lane.b32.xlu0 %v227_v10, %s1272_s19  ;;  %203 = vrot.lane.b32.xlu1 %v199_v11, %s1272_s19 }
  0x20   : > { %205 = vrot.lane.b32.xlu0 %v200_v13, %s1272_s19  ;;  %1181 = vrot.lane.b32.xlu1 %v1180_v14, %s1271_s18 }
  0x24   : > { %397 = vrot.lane.b32.xlu0 %v199_v11, %s1275_s20  ;;  %399 = vrot.lane.b32.xlu1 %v200_v13, %s1275_s20 }
  0x28   : > { %1186 = vrot.lane.b32.xlu0 %v1180_v14, %s1272_s19  ;;  %593 = vrot.lane.b32.xlu1 %v199_v11, %s1276_s21 }
  0x2c   : > { %595 = vrot.lane.b32.xlu0 %v200_v13, %s1276_s21  ;;  %1191 = vrot.lane.b32.xlu1 %v1180_v14, %s1275_s20 }
  0x30   : > { %789 = vrot.lane.b32.xlu0 %v199_v11, %s1271_s18  ;;  %791 = vrot.lane.b32.xlu1 %v200_v13, %s1271_s18 }
  0x34   : > { %1196 = vrot.lane.b32.xlu0 %v1180_v14, %s1276_s21  ;;  %377 = vrot.lane.b32.xlu1 %v172_v0, %s1277_s22 }
  0x38   : > { %379 = vrot.lane.b32.xlu0 %v174_v1, %s1277_s22  ;;  %575 = vrot.lane.b32.xlu1 %v172_v0, %s1278_s23 }
  0x3c   : > { %577 = vrot.lane.b32.xlu0 %v174_v1, %s1278_s23  ;;  %389 = vrot.lane.b32.xlu1 %v1355_v15, %s1279_s26 }
  0x40   : > { %391 = vrot.lane.b32.xlu0 %v1363_v16, %s1279_s26  ;;  %771 = vrot.lane.b32.xlu1 %v172_v0, %s1279_s26 }
  0x44   : > { %773 = vrot.lane.b32.xlu0 %v174_v1, %s1279_s26  ;;  %585 = vrot.lane.b32.xlu1 %v1355_v15, %s1278_s23 }
  0x48   : > { %587 = vrot.lane.b32.xlu0 %v1363_v16, %s1278_s23  ;;  %781 = vrot.lane.b32.xlu1 %v1355_v15, %s1277_s22 }
  0x4c   : > { %783 = vrot.lane.b32.xlu0 %v1363_v16, %s1277_s22 }
  0x8a   : > { %v1177_v17 = vpop.permute.xlu1 %1176  ;;  %v231_v18 = vpop.permute.xlu0 %230 }
  0x8b   : > { %v1178_v19 = vunpack.i.l.bf16 %v1177_v17  ;;  %v1179_v21 = vunpack.i.h.bf16 %v1177_v17 }
  0x8d   : > { %v244_v22 = vsel %vm217_vm1, %v231_v18, %v1178_v19 }
  0x8e   : > { %v246_v24 = vmul.f32 %v244_v22, %v1380_v20  ;;  %v233_v25 = vpop.permute.xlu0 %232  ;;  %v204_v26 = vpop.permute.xlu1 %203 }
  0x8f   : > { %v245_v29 = vsel %vm217_vm1, %v233_v25, %v1179_v21 }
  0x90   : > { %v247_v30 = vmul.f32 %v245_v29, %v1386_v23  ;;  %v248_v33 = vadd.f32 %v246_v24, %v224_v27 }
  0x92   : > { %v206_v31 = vpop.permute.xlu0 %205  ;;  %v1182_v32 = vpop.permute.xlu1 %1181  ;;  %v249_v34 = vadd.f32 %v247_v30, %v225_v28 }
  0x93   : > { %v1184_v35 = vunpack.i.h.bf16 %v1182_v32  ;;  %v1183_v36 = vunpack.i.l.bf16 %v1182_v32 }
  0x94   : > { %v253_v39 = vpack.c.bf16 %v249_v34, %v248_v33 }
  0x95   : > { %v219_v40 = vsel %vm217_vm1, %v206_v31, %v1184_v35  ;;  %v218_v41 = vsel %vm217_vm1, %v204_v26, %v1183_v36 }
  0x96   : > { %v221_v42 = vmul.f32 %v219_v40, %v1386_v23  ;;  %v220_v43 = vmul.f32 %v218_v41, %v1380_v20  ;;  %v398_v44 = vpop.permute.xlu0 %397  ;;  %v259_v45 = vsel %vm254_vm2, %v253_v39, 0  ;;  %v400_v46 = vpop.permute.xlu1 %399 }
  0x97   : > { %1110 = vmatpush3.bf16.xpose.msra.mxu0 %v259_v45 }
  0x98   : > { %v223_v47 = vadd.f32 %v221_v42, %v198_v37  ;;  %v222_v48 = vadd.f32 %v220_v43, %v197_v38  ;;  %1127 = vmatprep.subr.bf16.mxu0 %v1273_v12 }
  0x9a   : > { %v1187_v49 = vpop.permute.xlu0 %1186  ;;  %v594_v50 = vpop.permute.xlu1 %593  ;;  %v250_v51 = vmul.f32 0.17677669, %v222_v48  ;;  %v251_v52 = vmul.f32 0.17677669, %v223_v47 }
  0x9b   : > { %v1189_v58 = vunpack.i.h.bf16 %v1187_v49  ;;  %v1188_v7 = vunpack.i.l.bf16 %v1187_v49 }
  0x9c   : > { %v252_v53 = vpack.c.bf16 %v251_v52, %v250_v51 }
  0x9d   : > { %v410_v63 = vsel %vm217_vm1, %v400_v46, %v1189_v58  ;;  %v409_v19 = vsel %vm217_vm1, %v398_v44, %v1188_v7 }
  0x9e   : > { %v596_v54 = vpop.permute.xlu0 %595  ;;  %1112 = vmatmul.mubr.msk.bf16.vlgmr.msra.gmra.mrb[0].mxu0 %vm254_vm2, %v252_v53  ;;  %v1192_v55 = vpop.permute.xlu1 %1191  ;;  %v412_v4 = vmul.f32 %v410_v63, %v1386_v23  ;;  %v411_v22 = vmul.f32 %v409_v19, %v1380_v20  ;;  %v180_v53 = vlaneseq }
  0x9f   : > { %1129 = vmatprep.mubr.msk.bf16.mxu0 %vm1274_vm0, %v1273_v12  ;;  %v1194_v0 = vunpack.i.h.bf16 %v1192_v55  ;;  %v1193_v17 = vunpack.i.l.bf16 %v1192_v55 }
  0xa0   : > { %v1449_v55 = vand.u32 127, %v180_v53 }
  0xa1   : > { %v606_v10 = vsel %vm217_vm1, %v596_v54, %v1194_v0  ;;  %v605_v25 = vsel %vm217_vm1, %v594_v50, %v1193_v17  ;;  %v1447_v54 = vshrl.u32 %v180_v53, 7 }
  0xa2   : > { %v790_v56 = vpop.permute.xlu0 %789  ;;  %v792_v57 = vpop.permute.xlu1 %791  ;;  %v608_v14 = vmul.f32 %v606_v10, %v1386_v23  ;;  %v607_v26 = vmul.f32 %v605_v25, %v1380_v20 }
  0xa3   : > { %vm185_vm3 = vcmp.le.s32.totalorder %v1449_v55, %v1447_v54 }
  0xa6   : > { %v1197_v59 = vpop.permute.xlu0 %1196  ;;  %v378_v60 = vpop.permute.xlu1 %377 }
  0xa7   : > { %v381_v61 = vrot.slane %v378_v60, 4  ;;  %v1199_v8 = vunpack.i.h.bf16 %v1197_v59  ;;  %v1198_v24 = vunpack.i.l.bf16 %v1197_v59 }
  0xa9   : > { %v385_v62 = vunpack.c.l.bf16 %v381_v61  ;;  %v802_v18 = vsel %vm217_vm1, %v792_v57, %v1199_v8  ;;  %v801_v27 = vsel %vm217_vm1, %v790_v56, %v1198_v24  ;;  %v1452_v56 = vadd.s32 8, %v1447_v54 }
  0xaa   : > { %v380_v1 = vpop.permute.xlu0 %379  ;;  %v804_v21 = vmul.f32 %v802_v18, %v1386_v23  ;;  %v803_v28 = vmul.f32 %v801_v27, %v1380_v20  ;;  %v576_v29 = vpop.permute.xlu1 %575 }
  0xab   : > { %v382_v2 = vrot.slane %v380_v1, 4  ;;  %v425_v3 = vsub.f32 0.0, %v385_v62  ;;  %v423_v43 = vmul.f32 %v385_v62, %v1355_v15  ;;  %vm186_vm4 = vcmp.le.s32.totalorder %v1449_v55, %v1452_v56 }
  0xad   : > { %v386_v5 = vunpack.c.l.bf16 %v382_v2  ;;  %429 = vrot.lane.b32.xlu0 %v425_v3, %s1272_s19 }
  0xae   : > { %v578_v30 = vpop.permute.xlu0 %577  ;;  %v390_v31 = vpop.permute.xlu1 %389 }
  0xaf   : > { %v1200_v11 = vpack.i.bf16 %v386_v5, %v385_v62  ;;  %v426_v13 = vsub.f32 0.0, %v386_v5  ;;  %v424_v48 = vmul.f32 %v386_v5, %v1363_v16  ;;  %v580_v1 = vrot.slane %v578_v30, 4 }
  0xb0   : > { %v395_v2 = vmul.f32 %v390_v31, %v1322_v6 }
  0xb1   : > { %1201 = vrot.lane.b32.xlu1 %v1200_v11, %s1271_s18  ;;  %417 = vrot.lane.b32.xlu0 %v412_v4, %s1279_s26  ;;  %v1474_v7 = vunpack.c.l.bf16 %v580_v1  ;;  %v579_v11 = vrot.slane %v576_v29, 4 }
  0xb2   : > { %v392_v32 = vpop.permute.xlu0 %391  ;;  %v1429_v33 = vpop.permute.xlu1 %771 }
  0xb3   : > { %v396_v3 = vmul.f32 %v392_v32, %v1327_v9  ;;  %v583_v25 = vunpack.c.l.bf16 %v579_v11  ;;  %v775_v30 = vrot.slane %v1429_v33, 4 }
  0xb5   : > { %431 = vrot.lane.b32.xlu1 %v426_v13, %s1272_s19  ;;  %613 = vrot.lane.b32.xlu0 %v608_v14, %s1278_s23  ;;  %v621_v31 = vsub.f32 0.0, %v583_v25 }
  0xb6   : > { %v774_v34 = vpop.permute.xlu0 %773  ;;  %v586_v35 = vpop.permute.xlu1 %585 }
  0xb7   : > { %v776_v13 = vrot.slane %v774_v34, 4  ;;  %v591_v14 = vmul.f32 %v586_v35, %v1322_v6 }
  0xb9   : > { %415 = vrot.lane.b32.xlu1 %v411_v22, %s1279_s26  ;;  %809 = vrot.lane.b32.xlu0 %v804_v21, %s1277_s22  ;;  %v622_v21 = vsub.f32 0.0, %v1474_v7 }
  0xba   : > { %v588_v36 = vpop.permute.xlu0 %587  ;;  %v1431_v37 = vpop.permute.xlu1 %781 }
  0xbb   : > { %v592_v17 = vmul.f32 %v588_v36, %v1327_v9  ;;  %v1486_v36 = vld [vmem:[%s1314_s17 + $0x8] ss:$12 sps:$4 sm:$0xff]   ;;  %v787_v33 = vmul.f32 %v1431_v37, %v1322_v6 }
  0xbc   : > { %1116 = vmatpush3.bf16.msra.mxu1 %v1486_v36 }
  0xbd   : > { %611 = vrot.lane.b32.xlu1 %v607_v26, %s1278_s23  ;;  %v1479_v26 = vunpack.c.l.bf16 %v776_v13  ;;  %1121 = vmatprep.subr.bf16.mxu1 %v1273_v12  ;;  %v619_v13 = vmul.f32 %v583_v25, %v1355_v15 }
  0xbe   : > { %v1433_v38 = vpop.permute.xlu0 %783 }
  0xbf   : > { %v818_v35 = vsub.f32 0.0, %v1479_v26 }
  0xc1   : > { %807 = vrot.lane.b32.xlu1 %v803_v28, %s1277_s22 }
 0x11f   : > { %v430_v40 = vpop.permute.xlu0 %429 }
 0x123   : > { %v1202_v39 = vpop.permute.xlu1 %1201  ;;  %v418_v4 = vpop.permute.xlu0 %417 }
 0x124   : > { %v1204_v41 = vunpack.i.h.bf16 %v1202_v39  ;;  %v1203_v42 = vunpack.i.l.bf16 %v1202_v39  ;;  %v422_v8 = vadd.f32 %v418_v4, %v396_v3  ;;  %v1488_v39 = vunpack.c.l.bf16 %v775_v30 }
 0x126   : > { %v443_v44 = vsel %vm217_vm1, %v430_v40, %v1203_v42  ;;  %v450_v18 = vmul.f32 0.17677669, %v422_v8  ;;  %v1205_v42 = vpack.i.bf16 %v1474_v7, %v583_v25  ;;  %v1210_v6 = vpack.i.bf16 %v1479_v26, %v1488_v39 }
 0x127   : > { %v445_v45 = vmul.f32 %v443_v44, %v1380_v20  ;;  %v432_v46 = vpop.permute.xlu1 %431  ;;  %v614_v22 = vpop.permute.xlu0 %613 }
 0x128   : > { %v444_v47 = vsel %vm217_vm1, %v432_v46, %v1204_v41  ;;  %v618_v28 = vadd.f32 %v614_v22, %v592_v17  ;;  %v788_v41 = vmul.f32 %v1433_v38, %v1327_v9 }
 0x129   : > { %v1440_v49 = vadd.f32 %v445_v45, %v423_v43  ;;  %v446_v50 = vmul.f32 %v444_v47, %v1386_v23  ;;  %v817_v45 = vsub.f32 0.0, %v1488_v39 }
 0x12a   : > { %v646_v32 = vmul.f32 0.17677669, %v618_v28 }
 0x12b   : > { %v1443_v51 = vadd.f32 %v446_v50, %v424_v48  ;;  %v416_v5 = vpop.permute.xlu1 %415  ;;  %v810_v43 = vpop.permute.xlu0 %809 }
 0x12c   : > { %v421_v10 = vadd.f32 %v416_v5, %v395_v2  ;;  %v814_v46 = vadd.f32 %v810_v43, %v788_v41 }
 0x12d   : > { %v452_v52 = vpack.c.bf16 %v1443_v51, %v1440_v49  ;;  %v815_v49 = vmul.f32 %v1488_v39, %v1355_v15  ;;  %v816_v51 = vmul.f32 %v1479_v26, %v1363_v16 }
 0x12e   : > { %v449_v19 = vmul.f32 0.17677669, %v421_v10  ;;  %v842_v48 = vmul.f32 0.17677669, %v814_v46 }
 0x12f   : > { %v612_v24 = vpop.permute.xlu1 %611 }
 0x130   : > { %v451_v27 = vpack.c.bf16 %v450_v18, %v449_v19  ;;  %v617_v29 = vadd.f32 %v612_v24, %v591_v14  ;;  %v620_v14 = vmul.f32 %v1474_v7, %v1363_v16  ;;  %v460_v24 = vsel %vm254_vm2, %v452_v52, 0 }
 0x132   : > { %v645_v34 = vmul.f32 0.17677669, %v617_v29 }
 0x133   : > { %v808_v44 = vpop.permute.xlu1 %807 }
 0x134   : > { %v647_v40 = vpack.c.bf16 %v646_v32, %v645_v34  ;;  %v813_v47 = vadd.f32 %v808_v44, %v787_v33 }
 0x136   : > { %v841_v50 = vmul.f32 0.17677669, %v813_v47 }
 0x138   : > { %v843_v9 = vpack.c.bf16 %v842_v48, %v841_v50 }
 0x171   : > { %v295_v57 = vpop.f32.mrb[0].mxu0 }
 0x172   : > { %v1461_v58 = vsel %vm185_vm3, %v295_v57, -1e+30  ;;  %v1113_v59 = vpop.f32.mrb[1].mxu0 }
 0x173   : > { %v298_v60 = vpop.f32.mrb[2].mxu0  ;;  %v304_v61 = vsel %vm217_vm1, %v1461_v58, -inf }
 0x174   : > { %v1468_v62 = vsel %vm186_vm4, %v298_v60, -1e+30  ;;  %305 = vmax.xlane.f32.xlu1 %v304_v61  ;;  %v1114_v63 = vpop.f32.mrb[3].mxu0 }
 0x175   : > { %v307_v0 = vsel %vm217_vm1, %v1468_v62, -inf }
 0x176   : > { %308 = vmax.xlane.f32.xlu0 %v307_v0 }
 0x185   : > { %627 = vrot.lane.b32.xlu1 %v622_v21, %s1272_s19 }
 0x189   : > { %454 = vrot.lane.b32.xlu1 %v451_v27, %s1277_s22 }
 0x18c   : > { %625 = vrot.lane.b32.xlu0 %v621_v31, %s1272_s19 }
 0x18d   : > { %823 = vrot.lane.b32.xlu1 %v818_v35, %s1272_s19 }
 0x190   : > { %1206 = vrot.lane.b32.xlu0 %v1205_v42, %s1271_s18 }
 0x191   : > { %650 = vrot.lane.b32.xlu1 %v647_v40, %s1278_s23 }
 0x194   : > { %821 = vrot.lane.b32.xlu0 %v817_v45, %s1272_s19 }
 0x198   : > { %1211 = vrot.lane.b32.xlu0 %v1210_v6, %s1271_s18 }
 0x19c   : > { %846 = vrot.lane.b32.xlu0 %v843_v9, %s1279_s26 }
 0x201   : > { %v306_v37 = vpop.xlane.xlu1 %305 }
 0x202   : > { %v310_v38 = vsub.f32 %v1461_v58, %v306_v37 }
 0x203   : > { %v309_v53 = vpop.xlane.xlu0 %308 }
 0x204   : > { %v312_v57 = vmul.f32 1.442695, %v310_v38  ;;  %v311_v59 = vsub.f32 %v1468_v62, %v309_v53 }
 0x205   : > { %v628_v63 = vpop.permute.xlu1 %627 }
 0x206   : > { %v314_v60 = vmul.f32 1.442695, %v311_v59  ;;  %1231 = vpow2.f32 %v312_v57 }
 0x207   : > { %v626_v61 = vpop.permute.xlu0 %625 }
 0x208   : > { %1233 = vpow2.f32 %v314_v60 }
 0x209   : > { %v455_v5 = vpop.permute.xlu1 %454 }
 0x20b   : > { %v1207_v0 = vpop.permute.xlu0 %1206 }
 0x20c   : > { %v1209_v1 = vunpack.i.h.bf16 %v1207_v0  ;;  %v1208_v2 = vunpack.i.l.bf16 %v1207_v0 }
 0x20d   : > { %v824_v22 = vpop.permute.xlu1 %823 }
 0x20e   : > { %v640_v3 = vsel %vm217_vm1, %v628_v63, %v1209_v1  ;;  %v639_v4 = vsel %vm217_vm1, %v626_v61, %v1208_v2 }
 0x20f   : > { %v822_v8 = vpop.permute.xlu0 %821  ;;  %v642_v58 = vmul.f32 %v640_v3, %v1386_v23  ;;  %v641_v62 = vmul.f32 %v639_v4, %v1380_v20 }
 0x210   : > { %v1511_v10 = vpop.eup %1231 }
 0x211   : > { %v643_v27 = vadd.f32 %v641_v62, %v619_v13  ;;  %v644_v28 = vadd.f32 %v642_v58, %v620_v14 }
 0x212   : > { %v1515_v11 = vpop.eup %1233 }
 0x213   : > { %v1212_v17 = vpop.permute.xlu0 %1211  ;;  %v322_v18 = vpack.c.bf16 %v1515_v11, %v1511_v10  ;;  %v648_v31 = vpack.c.bf16 %v644_v28, %v643_v27 }
 0x214   : > { %v1214_v19 = vunpack.i.h.bf16 %v1212_v17  ;;  %v1213_v21 = vunpack.i.l.bf16 %v1212_v17 }
 0x215   : > { %1118 = vmatmul.mubr.msk.bf16.vlgmr.msra.gmra.mrb[0].mxu1 %vm217_vm1, %v322_v18  ;;  %v656_v52 = vsel %vm254_vm2, %v648_v31, 0 }
 0x216   : > { %v836_v25 = vsel %vm217_vm1, %v824_v22, %v1214_v19  ;;  %v835_v7 = vsel %vm217_vm1, %v822_v8, %v1213_v21  ;;  %1122 = vmatpush3.bf16.xpose.msra.mxu1 %v460_v24  ;;  %1123 = vmatprep.mubr.msk.bf16.mxu1 %vm1274_vm0, %v1273_v12 }
 0x217   : > { %1133 = vmatprep.subr.bf16.mxu1 %v1273_v12  ;;  %v838_v29 = vmul.f32 %v836_v25, %v1386_v23  ;;  %v837_v30 = vmul.f32 %v835_v7, %v1380_v20  ;;  %v651_v23 = vpop.permute.xlu1 %650  ;;  %v847_v16 = vpop.permute.xlu0 %846 }
 0x219   : > { %v839_v32 = vadd.f32 %v837_v30, %v815_v49  ;;  %v840_v34 = vadd.f32 %v838_v29, %v816_v51 }
 0x21b   : > { %v844_v20 = vpack.c.bf16 %v840_v34, %v839_v32 }
 0x21d   : > { %1124 = vmatmul.mubr.msk.bf16.vlgmr.msra.gmra.mrb[4].mxu1 %vm254_vm2, %v455_v5  ;;  %v852_v15 = vsel %vm254_vm2, %v844_v20, 0  ;;  %v316_v20 = vsel %vm217_vm1, %v1511_v10, 0.0 }
 0x21e   : > { %1134 = vmatpush3.bf16.xpose.msra.mxu1 %v656_v52  ;;  %1135 = vmatprep.mubr.msk.bf16.mxu1 %vm1274_vm0, %v1273_v12 }
 0x21f   : > { %1145 = vmatprep.subr.bf16.mxu1 %v1273_v12 }
 0x225   : > { %1136 = vmatmul.mubr.msk.bf16.vlgmr.msra.gmra.mrb[8].mxu1 %vm254_vm2, %v651_v23 }
 0x226   : > { %1146 = vmatpush3.bf16.xpose.msra.mxu1 %v852_v15  ;;  %1147 = vmatprep.mubr.msk.bf16.mxu1 %vm1274_vm0, %v1273_v12 }
 0x22d   : > { %1148 = vmatmul.mubr.msk.bf16.vlgmr.msra.gmra.mrb[12].mxu1 %vm254_vm2, %v847_v16 }
 0x2e8   : > { %v1548_v26 = vpop.f32.mrb[0].mxu1 }
 0x2e9   : > { %v1119_v35 = vpop.f32.mrb[1].mxu1 }
 0x2ea   : > { %v1550_v39 = vpop.f32.mrb[2].mxu1 }
 0x2eb   : > { %v1120_v40 = vpop.f32.mrb[3].mxu1 }
 0x2f0   : > { %v496_v33 = vpop.f32.mrb[4].mxu1 }
 0x2f1   : > { %v503_v41 = vsel %vm185_vm3, %v496_v33, -1e+30  ;;  %v1125_v42 = vpop.f32.mrb[5].mxu1 }
 0x2f2   : > { %v499_v43 = vpop.f32.mrb[6].mxu1  ;;  %v505_v44 = vsel %vm217_vm1, %v503_v41, -inf }
 0x2f3   : > { %v504_v45 = vsel %vm186_vm4, %v499_v43, -1e+30  ;;  %506 = vmax.xlane.f32.xlu1 %v505_v44  ;;  %v1126_v46 = vpop.f32.mrb[7].mxu1 }
 0x2f4   : > { %v508_v47 = vsel %vm217_vm1, %v504_v45, -inf }
 0x2f5   : > { %509 = vmax.xlane.f32.xlu0 %v508_v47 }
 0x2f8   : > { %v692_v48 = vpop.f32.mrb[8].mxu1 }
 0x2f9   : > { %v699_v50 = vsel %vm185_vm3, %v692_v48, -1e+30  ;;  %v1137_v6 = vpop.f32.mrb[9].mxu1 }
 0x2fa   : > { %v695_v9 = vpop.f32.mrb[10].mxu1  ;;  %v701_v37 = vsel %vm217_vm1, %v699_v50, -inf }
 0x2fb   : > { %v700_v38 = vsel %vm186_vm4, %v695_v9, -1e+30  ;;  %702 = vmax.xlane.f32.xlu0 %v701_v37  ;;  %v1138_v53 = vpop.f32.mrb[11].mxu1 }
 0x2fc   : > { %v704_v57 = vsel %vm217_vm1, %v700_v38, -inf }
 0x2fd   : > { %705 = vmax.xlane.f32.xlu1 %v704_v57 }
 0x300   : > { %v888_v59 = vpop.f32.mrb[12].mxu1 }
 0x301   : > { %v895_v60 = vsel %vm185_vm3, %v888_v59, -1e+30  ;;  %v1149_v61 = vpop.f32.mrb[13].mxu1 }
 0x302   : > { %v891_v63 = vpop.f32.mrb[14].mxu1  ;;  %v897_v0 = vsel %vm217_vm1, %v895_v60, -inf }
 0x303   : > { %898 = vmax.xlane.f32.xlu0 %v897_v0  ;;  %v1150_v1 = vpop.f32.mrb[15].mxu1  ;;  %v896_v2 = vsel %vm186_vm4, %v891_v63, -1e+30 }
 0x304   : > { %v900_v3 = vsel %vm217_vm1, %v896_v2, -inf }
 0x30e   : > { %720 = vrot.lane.b32.xlu1 %v1486_v36, %s1278_s23 }
 0x319   : > { %524 = vrot.lane.b32.xlu0 %v1486_v36, %s1277_s22 }
 0x332   : > { %901 = vmax.xlane.f32.xlu1 %v900_v3 }
 0x343   : > { %916 = vrot.lane.b32.xlu1 %v1486_v36, %s1279_s26 }
 0x380   : > { %v507_v54 = vpop.xlane.xlu1 %506 }
 0x381   : > { %v511_v4 = vsub.f32 %v503_v41, %v507_v54 }
 0x382   : > { %v510_v5 = vpop.xlane.xlu0 %509 }
 0x383   : > { %v513_v8 = vmul.f32 1.442695, %v511_v4  ;;  %v512_v58 = vsub.f32 %v504_v45, %v510_v5 }
 0x385   : > { %1235 = vpow2.f32 %v513_v8  ;;  %v515_v62 = vmul.f32 1.442695, %v512_v58 }
 0x387   : > { %1237 = vpow2.f32 %v515_v62 }
 0x388   : > { %v703_v13 = vpop.xlane.xlu0 %702 }
 0x389   : > { %v707_v14 = vsub.f32 %v699_v50, %v703_v13 }
 0x38a   : > { %v706_v17 = vpop.xlane.xlu1 %705 }
 0x38b   : > { %v709_v18 = vmul.f32 1.442695, %v707_v14  ;;  %v708_v55 = vsub.f32 %v700_v38, %v706_v17 }
 0x38d   : > { %1239 = vpow2.f32 %v709_v18  ;;  %v711_v56 = vmul.f32 1.442695, %v708_v55 }
 0x38e   : > { %v721_v30 = vpop.permute.xlu1 %720 }
 0x38f   : > { %v1236_v19 = vpop.eup %1235  ;;  %1241 = vpow2.f32 %v711_v56 }
 0x390   : > { %v899_v21 = vpop.xlane.xlu0 %898  ;;  %v517_v36 = vsel %vm217_vm1, %v1236_v19, 0.0 }
 0x391   : > { %v1238_v22 = vpop.eup %1237  ;;  %v903_v24 = vsub.f32 %v895_v60, %v899_v21  ;;  %518 = vadd.xlane.f32.xlu0 %v517_v36 }
 0x392   : > { %v520_v27 = vsel %vm217_vm1, %v1238_v22, 0.0  ;;  %v523_v7 = vpack.c.bf16 %v1238_v22, %v1236_v19 }
 0x393   : > { %v905_v28 = vmul.f32 1.442695, %v903_v24  ;;  %521 = vadd.xlane.f32.xlu1 %v520_v27 }
 0x394   : > { %v525_v25 = vpop.permute.xlu0 %524 }
 0x395   : > { %1243 = vpow2.f32 %v905_v28  ;;  %1128 = vmatpush3.bf16.msra.mxu0 %v525_v25 }
 0x396   : > { %1139 = vmatprep.subr.bf16.mxu0 %v1273_v12 }
 0x397   : > { %v1240_v29 = vpop.eup %1239 }
 0x398   : > { %1130 = vmatmul.mubr.msk.bf16.vlgmr.msra.gmra.mrb[4].mxu0 %vm217_vm1, %v523_v7  ;;  %v713_v31 = vsel %vm217_vm1, %v1240_v29, 0.0 }
 0x399   : > { %v1242_v49 = vpop.eup %1241  ;;  %714 = vadd.xlane.f32.xlu0 %v713_v31  ;;  %1140 = vmatpush3.bf16.msra.mxu0 %v721_v30 }
 0x39a   : > { %1141 = vmatprep.mubr.msk.bf16.mxu0 %vm1274_vm0, %v1273_v12  ;;  %1151 = vmatprep.subr.bf16.mxu0 %v1273_v12  ;;  %v716_v51 = vsel %vm217_vm1, %v1242_v49, 0.0  ;;  %v719_v52 = vpack.c.bf16 %v1242_v49, %v1240_v29 }
 0x39d   : > { %717 = vadd.xlane.f32.xlu0 %v716_v51 }
 0x39f   : > { %v1244_v32 = vpop.eup %1243 }
 0x3a0   : > { %1142 = vmatmul.mubr.msk.bf16.vlgmr.msra.gmra.mrb[8].mxu0 %vm217_vm1, %v719_v52  ;;  %v909_v34 = vsel %vm217_vm1, %v1244_v32, 0.0 }
 0x3a1   : > { %910 = vadd.xlane.f32.xlu1 %v909_v34  ;;  %1153 = vmatprep.mubr.msk.bf16.mxu0 %vm1274_vm0, %v1273_v12  ;;  %v319_v12 = vsel %vm217_vm1, %v1515_v11, 0.0 }
 0x3a5   : > { %317 = vadd.xlane.f32.xlu1 %v316_v20 }
 0x3bf   : > { %v902_v23 = vpop.xlane.xlu1 %901 }
 0x3c0   : > { %v904_v15 = vsub.f32 %v896_v2, %v902_v23 }
 0x3c2   : > { %v907_v16 = vmul.f32 1.442695, %v904_v15 }
 0x3c3   : > { %v917_v35 = vpop.permute.xlu1 %916 }
 0x3c4   : > { %1245 = vpow2.f32 %v907_v16  ;;  %1152 = vmatpush3.bf16.msra.mxu0 %v917_v35 }
 0x3ce   : > { %v1246_v40 = vpop.eup %1245 }
 0x3cf   : > { %v912_v33 = vsel %vm217_vm1, %v1246_v40, 0.0  ;;  %v915_v41 = vpack.c.bf16 %v1246_v40, %v1244_v32 }
 0x3d0   : > { %913 = vadd.xlane.f32.xlu0 %v912_v33 }
 0x3d1   : > { %1154 = vmatmul.mubr.msk.bf16.vlgmr.msra.gmra.mrb[12].mxu0 %vm217_vm1, %v915_v41 }
 0x3d4   : > { %320 = vadd.xlane.f32.xlu0 %v319_v12 }
 0x41e   : > { %v519_v42 = vpop.xlane.xlu0 %518 }
 0x41f   : > { %1247 = vrcp.f32 %v519_v42 }
 0x420   : > { %v522_v10 = vpop.xlane.xlu1 %521 }
 0x421   : > { %1249 = vrcp.f32 %v522_v10 }
 0x426   : > { %v715_v43 = vpop.xlane.xlu0 %714 }
 0x427   : > { %1251 = vrcp.f32 %v715_v43 }
 0x429   : > { %v1248_v46 = vpop.eup %1247 }
 0x42a   : > { %v718_v44 = vpop.xlane.xlu0 %717 }
 0x42b   : > { %1253 = vrcp.f32 %v718_v44  ;;  %v1250_v48 = vpop.eup %1249 }
 0x42e   : > { %v911_v2 = vpop.xlane.xlu1 %910 }
 0x42f   : > { %1255 = vrcp.f32 %v911_v2 }
 0x431   : > { %v1252_v53 = vpop.eup %1251 }
 0x432   : > { %v318_v18 = vpop.xlane.xlu1 %317 }
 0x435   : > { %v1254_v59 = vpop.eup %1253 }
 0x439   : > { %v1256_v4 = vpop.eup %1255 }
 0x45d   : > { %v914_v3 = vpop.xlane.xlu0 %913 }
 0x45e   : > { %1257 = vrcp.f32 %v914_v3 }
 0x45f   : > { %1259 = vrcp.f32 %v318_v18 }
 0x461   : > { %v321_v55 = vpop.xlane.xlu0 %320 }
 0x462   : > { %1261 = vrcp.f32 %v321_v55 }
 0x468   : > { %v1258_v8 = vpop.eup %1257 }
 0x469   : > { %v1260_v19 = vpop.eup %1259 }
 0x46a   : > { %v375_v25 = vmul.f32 %v1260_v19, %v1548_v26 }
 0x46b   : > { %v564_v45 = vpop.f32.mrb[4].mxu0 }
 0x46c   : > { %v1131_v47 = vpop.f32.mrb[5].mxu0  ;;  %v573_v6 = vmul.f32 %v1248_v46, %v564_v45  ;;  %v1262_v36 = vpop.eup %1261 }
 0x46d   : > { %v567_v50 = vpop.f32.mrb[6].mxu0  ;;  %v376_v7 = vmul.f32 %v1262_v36, %v1550_v39 }
 0x46e   : > { %v574_v9 = vmul.f32 %v1250_v48, %v567_v50  ;;  %v1132_v37 = vpop.f32.mrb[7].mxu0 }
 0x470   : > { %v1215_v38 = vpack.i.bf16 %v574_v9, %v573_v6 }
 0x472   : > { %1216 = vrot.lane.b32.xlu1 %v1215_v38, %s1279_s26 }
 0x473   : > { %v760_v11 = vpop.f32.mrb[8].mxu0 }
 0x474   : > { %v1143_v57 = vpop.f32.mrb[9].mxu0  ;;  %v769_v61 = vmul.f32 %v1252_v53, %v760_v11 }
 0x475   : > { %v763_v60 = vpop.f32.mrb[10].mxu0 }
 0x476   : > { %v770_v63 = vmul.f32 %v1254_v59, %v763_v60  ;;  %v1144_v0 = vpop.f32.mrb[11].mxu0 }
 0x478   : > { %v1220_v1 = vpack.i.bf16 %v770_v63, %v769_v61 }
 0x47a   : > { %1221 = vrot.lane.b32.xlu0 %v1220_v1, %s1278_s23 }
 0x4a4   : > { %v956_v54 = vpop.f32.mrb[12].mxu0 }
 0x4a5   : > { %v1155_v5 = vpop.f32.mrb[13].mxu0  ;;  %v965_v62 = vmul.f32 %v1256_v4, %v956_v54 }
 0x4a6   : > { %v959_v58 = vpop.f32.mrb[14].mxu0 }
 0x4a7   : > { %v966_v13 = vmul.f32 %v1258_v8, %v959_v58  ;;  %v1156_v14 = vpop.f32.mrb[15].mxu0 }
 0x4a9   : > { %v1225_v17 = vpack.i.bf16 %v966_v13, %v965_v62 }
 0x4ab   : > { %1226 = vrot.lane.b32.xlu1 %v1225_v17, %s1277_s22 }
 0x4e4   : > { %v1217_v56 = vpop.permute.xlu1 %1216 }
 0x4e5   : > { %v1219_v22 = vunpack.i.h.bf16 %v1217_v56  ;;  %v1218_v24 = vunpack.i.l.bf16 %v1217_v56 }
 0x4e7   : > { %v992_v30 = vsel %vm254_vm2, %v376_v7, %v1219_v22  ;;  %v991_v31 = vsel %vm254_vm2, %v375_v25, %v1218_v24 }
 0x4ec   : > { %v1222_v21 = vpop.permute.xlu0 %1221 }
 0x4ed   : > { %v1224_v27 = vunpack.i.h.bf16 %v1222_v21  ;;  %v1223_v28 = vunpack.i.l.bf16 %v1222_v21 }
 0x4ef   : > { %v995_v52 = vsel %vm993_vm5, %v992_v30, %v1224_v27  ;;  %v994_v32 = vsel %vm993_vm5, %v991_v31, %v1223_v28 }
 0x51d   : > { %v1227_v29 = vpop.permute.xlu1 %1226 }
 0x51e   : > { %v1229_v49 = vunpack.i.h.bf16 %v1227_v29  ;;  %v1228_v51 = vunpack.i.l.bf16 %v1227_v29 }
 0x520   : > { %v998_v34 = vsel %vm996_vm6, %v995_v52, %v1229_v49  ;;  %v997_v26 = vsel %vm996_vm6, %v994_v32, %v1228_v51 }
 0x521   : > { %v1091_v20 = vpack.c.bf16 %v998_v34, %v997_v26 }
 0x523   : > { %1092 = vst [vmem:[%s170_s9] sm:$0xff] %v1091_v20  }
 0x524 PF: > { %s13_s12 = sadd.s32 1, %s1269_s12  }
 0x525   : > { %p10_p4 = scmp.ge.s32.totalorder %s13_s12, 4  }
 0x527   :  { %12 = sbr.rel (!%p10_p4) target bundleno = 1 (0x1), region = 62 }

// kernel: decoder_lm_forward.15
= control target key start
LH: loop header
LB: loop body
LE: loop exit
PB: predicated region body
PF: predicated region fallthrough
CT: control target
= control target key end

     0   :  { %s508_s1 = inlined_call_operand.vmem [shape: bf16[256,128], index: 1, kind: input, shape index: {}]   ;;  %s509_s0 = inlined_call_operand.vmem [shape: bf16[32,256], index: 0, kind: input, shape index: {}]   ;;  %s510_s3 = inlined_call_operand.vmem [shape: bf16[32,128], index: 3, kind: input, shape index: {}]   ;;  %s511_s2 = inlined_call_operand.vmem [shape: f32[1,128], index: 2, kind: input, shape index: {}]   ;;  %s512_s4 = inlined_call_operand.vmem [shape: bf16[32,128], index: 4, kind: output, shape index: {}]  }
   0x1   :  { %v386_v0 = vld [vmem:[%s508_s1 + $0x40] sm:$0xff]   ;;  %v388_v2 = vld [vmem:[%s508_s1 + $0x48] sm:$0xff]   ;;  %v390_v4 = vld [vmem:[%s508_s1 + $0x50] sm:$0xff]  }
   0x2   :  { %v387_v1 = vld [vmem:[%s508_s1] sm:$0xff]   ;;  %342 = vmatprep.subr.bf16.mxu0 %v386_v0  ;;  %370 = vmatprep.subr.bf16.mxu1 %v386_v0  ;;  %v389_v3 = vld [vmem:[%s508_s1 + $0x8] sm:$0xff]   ;;  %v391_v5 = vld [vmem:[%s508_s1 + $0x10] sm:$0xff]  }
   0x3   :  { %343 = vmatpush3.bf16.msra.mxu0 %v387_v1  ;;  %378 = vmatpush3.bf16.msra.mxu1 %v387_v1  ;;  %v392_v6 = vld [vmem:[%s508_s1 + $0x58] sm:$0xff]   ;;  %v394_v8 = vld [vmem:[%s508_s1 + $0x60] sm:$0xff]   ;;  %v396_v10 = vld [vmem:[%s508_s1 + $0x68] sm:$0xff]  }
   0x4   :  { %344 = vmatprep.subr.bf16.mxu0 %v388_v2  ;;  %371 = vmatprep.subr.bf16.mxu1 %v388_v2  ;;  %v393_v7 = vld [vmem:[%s508_s1 + $0x18] sm:$0xff]   ;;  %v395_v9 = vld [vmem:[%s508_s1 + $0x20] sm:$0xff]   ;;  %v397_v13 = vld [vmem:[%s508_s1 + $0x28] sm:$0xff]  }
   0x5   :  { %v404_v11 = vld [vmem:[%s509_s0 + $0x4] ss:$8 sps:$4 sm:$0xff]   ;;  %v407_v12 = vld [vmem:[%s509_s0 + $0x14] ss:$8 sps:$4 sm:$0xff]   ;;  %v402_v18 = vld [vmem:[%s509_s0] ss:$8 sps:$4 sm:$0xff]  }
   0x6   :  { %v398_v14 = vld [vmem:[%s508_s1 + $0x70] sm:$0xff]   ;;  %214 = vmatprep.mubr.bf16.mxu0 %v404_v11  ;;  %222 = vmatprep.mubr.bf16.mxu1 %v407_v12  ;;  %v400_v16 = vld [vmem:[%s508_s1 + $0x78] sm:$0xff]   ;;  %v323_v22 = vld [vmem:[%s510_s3] sm:$0xff]  }
   0x7   :  { %345 = vmatpush3.bf16.msra.mxu0 %v389_v3  ;;  %379 = vmatpush3.bf16.msra.mxu1 %v389_v3  ;;  %v399_v15 = vld [vmem:[%s508_s1 + $0x30] sm:$0xff]   ;;  %v401_v17 = vld [vmem:[%s508_s1 + $0x38] sm:$0xff]   ;;  %v340_v23 = vld [vmem:[%s510_s3 + $0x8] sm:$0xff]   ;;  %v324_v31 = vunpack.c.l.bf16 %v323_v22  ;;  %v325_v34 = vunpack.c.h.bf16 %v323_v22 }
   0x8   :  { %346 = vmatprep.subr.bf16.mxu0 %v390_v4  ;;  %372 = vmatprep.subr.bf16.mxu1 %v390_v4  ;;  %v405_v19 = vld [vmem:[%s509_s0 + $0x10] ss:$8 sps:$4 sm:$0xff]   ;;  %v313_v25 = vld [vmem:[%s511_s2] ss:$0 sm:$0xff]  ;;  %v328_v32 = vunpack.c.l.bf16 %v340_v23  ;;  %v329_v36 = vunpack.c.h.bf16 %v340_v23 }
   0xb   :  { %347 = vmatpush3.bf16.msra.mxu0 %v391_v5  ;;  %380 = vmatpush3.bf16.msra.mxu1 %v391_v5 }
   0xc   :  { %348 = vmatprep.subr.bf16.mxu0 %v392_v6  ;;  %373 = vmatprep.subr.bf16.mxu1 %v392_v6 }
   0xf   :  { %349 = vmatpush3.bf16.msra.mxu0 %v393_v7  ;;  %381 = vmatpush3.bf16.msra.mxu1 %v393_v7 }
  0x10   :  { %350 = vmatprep.subr.bf16.mxu0 %v394_v8  ;;  %374 = vmatprep.subr.bf16.mxu1 %v394_v8 }
  0x13   :  { %351 = vmatpush3.bf16.msra.mxu0 %v395_v9  ;;  %382 = vmatpush3.bf16.msra.mxu1 %v395_v9 }
  0x14   :  { %352 = vmatprep.subr.bf16.mxu0 %v396_v10  ;;  %375 = vmatprep.subr.bf16.mxu1 %v396_v10 }
  0x17   :  { %353 = vmatpush3.bf16.msra.mxu0 %v397_v13  ;;  %383 = vmatpush3.bf16.msra.mxu1 %v397_v13 }
  0x18   :  { %354 = vmatprep.subr.bf16.mxu0 %v398_v14  ;;  %376 = vmatprep.subr.bf16.mxu1 %v398_v14 }
  0x1b   :  { %355 = vmatpush3.bf16.msra.mxu0 %v399_v15  ;;  %384 = vmatpush3.bf16.msra.mxu1 %v399_v15 }
  0x1c   :  { %356 = vmatprep.subr.bf16.mxu0 %v400_v16  ;;  %377 = vmatprep.subr.bf16.mxu1 %v400_v16 }
  0x1f   :  { %357 = vmatpush3.bf16.msra.mxu0 %v401_v17  ;;  %385 = vmatpush3.bf16.msra.mxu1 %v401_v17 }
  0x22   :  { %215 = vmatmul.mubr.bf16.vlgmr.msra.gmra.mrb[0].mxu0 %v402_v18  ;;  %223 = vmatmul.mubr.bf16.vlgmr.msra.gmra.mrb[0].mxu1 %v405_v19 }
  0xf5   :  { %v358_v20 = vpop.f32.mrb[0].mxu0  ;;  %v364_v21 = vpop.f32.mrb[0].mxu1 }
  0xf6   :  { %v359_v24 = vpop.f32.mrb[1].mxu0  ;;  %v365_v26 = vpop.f32.mrb[1].mxu1 }
  0xf7   :  { %v360_v27 = vadd.f32 %v359_v24, %v358_v20  ;;  %v366_v28 = vadd.f32 %v365_v26, %v364_v21  ;;  %v361_v29 = vpop.f32.mrb[2].mxu0  ;;  %v367_v30 = vpop.f32.mrb[2].mxu1 }
  0xf8   :  { %v362_v33 = vpop.f32.mrb[3].mxu0  ;;  %v368_v35 = vpop.f32.mrb[3].mxu1 }
  0xf9   :  { %v253_v37 = vadd.f32 %v360_v27, %v313_v25  ;;  %v255_v38 = vadd.f32 %v366_v28, %v313_v25  ;;  %v363_v39 = vadd.f32 %v362_v33, %v361_v29  ;;  %v369_v40 = vadd.f32 %v368_v35, %v367_v30 }
  0xfb   :  { %v254_v41 = vadd.f32 %v363_v39, %v313_v25  ;;  %v256_v42 = vadd.f32 %v369_v40, %v313_v25  ;;  %v265_v43 = vadd.f32 %v324_v31, %v253_v37  ;;  %v267_v44 = vadd.f32 %v328_v32, %v255_v38 }
  0xfd   :  { %v266_v45 = vadd.f32 %v325_v34, %v254_v41  ;;  %v268_v46 = vadd.f32 %v329_v36, %v256_v42 }
  0xff   :  { %v333_v47 = vpack.c.bf16 %v266_v45, %v265_v43  ;;  %v338_v48 = vpack.c.bf16 %v268_v46, %v267_v44 }
 0x101   :  { %334 = vst [vmem:[%s512_s4] sm:$0xff] %v333_v47   ;;  %341 = vst [vmem:[%s512_s4 + $0x8] sm:$0xff] %v338_v48  }

// kernel: decoder_lm_forward.21
= control target key start
LH: loop header
LB: loop body
LE: loop exit
PB: predicated region body
PF: predicated region fallthrough
CT: control target
= control target key end

     0   :  { %s571_s0 = inlined_call_operand.vmem [shape: bf16[32,128], index: 0, kind: input, shape index: {}]   ;;  %s572_s1 = inlined_call_operand.vmem [shape: bf16[128,256], index: 1, kind: input, shape index: {}]   ;;  %s573_s2 = inlined_call_operand.vmem [shape: f32[1,256], index: 2, kind: input, shape index: {}]   ;;  %s574_s3 = inlined_call_operand.vmem [shape: f32[1,128], index: 3, kind: input, shape index: {}]   ;;  %s575_s4 = inlined_call_operand.vmem [shape: f32[1,128], index: 4, kind: input, shape index: {}]   ;;  %s576_s5 = inlined_call_operand.hbm [shape: f32[32,256], index: 5, kind: output, shape index: {}]  }
   0x1   :  { %v358_v0 = vld [vmem:[%s571_s0] sm:$0xff]   ;;  %v365_v1 = vld [vmem:[%s571_s0 + $0x8] sm:$0xff]  }
   0x2   :  { %v359_v2 = vunpack.c.l.bf16 %v358_v0  ;;  %v363_v3 = vunpack.c.l.bf16 %v365_v1  ;;  %v360_v4 = vunpack.c.h.bf16 %v358_v0  ;;  %v364_v5 = vunpack.c.h.bf16 %v365_v1 }
   0x4   :  { %42 = vadd.xlane.f32.xlu0 %v359_v2  ;;  %46 = vadd.xlane.f32.xlu1 %v363_v3 }
   0x5   :  { %10 = vsyncpa [#allocation4], 0  ;;  %v386_v6 = vld [vmem:[%s572_s1 + $0x4] ss:$8 sps:$4 sm:$0xff]   ;;  %v388_v7 = vld [vmem:[%s572_s1] ss:$8 sps:$4 sm:$0xff]  }
   0x6   :  { %v389_v8 = vld [vmem:[%s572_s1 + $0x14] ss:$8 sps:$4 sm:$0xff]   ;;  %215 = vmatprep.subr.bf16.mxu0 %v386_v6  ;;  %366 = vmatprep.subr.bf16.mxu1 %v386_v6  ;;  %v391_v25 = vld [vmem:[%s572_s1 + $0x10] ss:$8 sps:$4 sm:$0xff]   ;;  %v392_v26 = vld [vmem:[%s572_s1 + $0x24] ss:$8 sps:$4 sm:$0xff]  }
   0x7   :  { %216 = vmatpush1.bf16.msra.mxu0 %v388_v7  ;;  %374 = vmatpush1.bf16.msra.mxu1 %v388_v7  ;;  %v394_v27 = vld [vmem:[%s572_s1 + $0x20] ss:$8 sps:$4 sm:$0xff]   ;;  %v395_v28 = vld [vmem:[%s572_s1 + $0x34] ss:$8 sps:$4 sm:$0xff]   ;;  %v397_v29 = vld [vmem:[%s572_s1 + $0x30] ss:$8 sps:$4 sm:$0xff]   ;;  %v297_v7 = vlaneseq }
   0x8   :  { %44 = vadd.xlane.f32.xlu0 %v360_v4  ;;  %48 = vadd.xlane.f32.xlu1 %v364_v5  ;;  %v398_v30 = vld [vmem:[%s572_s1 + $0x44] ss:$8 sps:$4 sm:$0xff]   ;;  %v400_v31 = vld [vmem:[%s572_s1 + $0x40] ss:$8 sps:$4 sm:$0xff]   ;;  %v401_v32 = vld [vmem:[%s572_s1 + $0x54] ss:$8 sps:$4 sm:$0xff]  }
   0x9   :  { %217 = vmatprep.subr.bf16.mxu0 %v389_v8  ;;  %367 = vmatprep.subr.bf16.mxu1 %v389_v8  ;;  %v403_v33 = vld [vmem:[%s572_s1 + $0x50] ss:$8 sps:$4 sm:$0xff]   ;;  %v404_v34 = vld [vmem:[%s572_s1 + $0x64] ss:$8 sps:$4 sm:$0xff]   ;;  %v442_v35 = vmov 0   ;;  %v298_v8 = vshrl.u32 %v297_v7, 7 }
   0xa   :  { %247 = vmatprep.mubr.bf16.mxu0 %v442_v35  ;;  %257 = vmatprep.mubr.bf16.mxu1 %v442_v35  ;;  %v406_v36 = vld [vmem:[%s572_s1 + $0x60] ss:$8 sps:$4 sm:$0xff]   ;;  %v407_v37 = vld [vmem:[%s572_s1 + $0x74] ss:$8 sps:$4 sm:$0xff]   ;;  %v409_v38 = vld [vmem:[%s572_s1 + $0x70] ss:$8 sps:$4 sm:$0xff]  }
   0xb   :  { %218 = vmatpush1.bf16.msra.mxu0 %v391_v25  ;;  %375 = vmatpush1.bf16.msra.mxu1 %v391_v25  ;;  %v339_v53 = vld [vmem:[%s574_s3] ss:$0 sm:$0xff]  ;;  %s443_s30 = smov [#allocation3]  }
   0xc   :  { %219 = vmatprep.subr.bf16.mxu0 %v392_v26  ;;  %368 = vmatprep.subr.bf16.mxu1 %v392_v26  ;;  %v340_v58 = vld [vmem:[%s575_s4] ss:$0 sm:$0xff]  ;;  %s328_s6 = sshll.u32 %s443_s30, 4  ;;  %s329_s6 = int_to_ptr.vmem [resolvable:$true] %s328_s6 }
   0xd   :  { %p423_p1 = scmp.lt.s32.totalorder %s329_s6, %s329_s6 }
   0xf   :  { %220 = vmatpush1.bf16.msra.mxu0 %v394_v27  ;;  %376 = vmatpush1.bf16.msra.mxu1 %v394_v27 }
  0x10   :  { %221 = vmatprep.subr.bf16.mxu0 %v395_v28  ;;  %369 = vmatprep.subr.bf16.mxu1 %v395_v28 }
  0x13   :  { %222 = vmatpush1.bf16.msra.mxu0 %v397_v29  ;;  %377 = vmatpush1.bf16.msra.mxu1 %v397_v29 }
  0x14   :  { %223 = vmatprep.subr.bf16.mxu0 %v398_v30  ;;  %370 = vmatprep.subr.bf16.mxu1 %v398_v30 }
  0x17   :  { %224 = vmatpush1.bf16.msra.mxu0 %v400_v31  ;;  %378 = vmatpush1.bf16.msra.mxu1 %v400_v31 }
  0x18   :  { %225 = vmatprep.subr.bf16.mxu0 %v401_v32  ;;  %371 = vmatprep.subr.bf16.mxu1 %v401_v32 }
  0x1b   :  { %226 = vmatpush1.bf16.msra.mxu0 %v403_v33  ;;  %379 = vmatpush1.bf16.msra.mxu1 %v403_v33 }
  0x1c   :  { %227 = vmatprep.subr.bf16.mxu0 %v404_v34  ;;  %372 = vmatprep.subr.bf16.mxu1 %v404_v34 }
  0x1f   :  { %228 = vmatpush1.bf16.msra.mxu0 %v406_v36  ;;  %380 = vmatpush1.bf16.msra.mxu1 %v406_v36 }
  0x20   :  { %229 = vmatprep.subr.bf16.mxu0 %v407_v37  ;;  %373 = vmatprep.subr.bf16.mxu1 %v407_v37 }
  0x23   :  { %230 = vmatpush1.bf16.msra.mxu0 %v409_v38  ;;  %381 = vmatpush1.bf16.msra.mxu1 %v409_v38 }
  0x91   :  { %v43_v9 = vpop.xlane.xlu0 %42  ;;  %v47_v10 = vpop.xlane.xlu1 %46 }
  0x92   :  { %v51_v11 = vmul.f32 0.0078125, %v43_v9  ;;  %v53_v12 = vmul.f32 0.0078125, %v47_v10  ;;  %v299_v9 = vsub.s32 0, %v298_v8  ;;  %v295_v10 = vld [vmem:[%s573_s2] sm:$0x3]  ;;  %s418_s2 = scalar_lea.vmem %s329_s6, 1024 }
  0x93   :  { %p419_p0 = scmp.ne.s32.totalorder %s329_s6, %s418_s2  ;;  %p424_p2 = scmp.lt.s32.totalorder %s418_s2, %s418_s2 }
  0x94   :  { %v491_v13 = vsub.f32 %v359_v2, %v51_v11  ;;  %v493_v14 = vsub.f32 %v363_v3, %v53_v12  ;;  %v303_v11 = vsub.s32 1, %v298_v8  ;;  %v300_v12 = vrot.slane %v295_v10, %v299_v9 }
  0x95   :  { %v45_v15 = vpop.xlane.xlu0 %44  ;;  %v49_v16 = vpop.xlane.xlu1 %48  ;;  %p425_p3 = por %p424_p2, %p423_p1 }
  0x96   :  { %v52_v17 = vmul.f32 0.0078125, %v45_v15  ;;  %v59_v18 = vmul.f32 %v491_v13, %v491_v13  ;;  %v54_v19 = vmul.f32 0.0078125, %v49_v16  ;;  %v61_v22 = vmul.f32 %v493_v14, %v493_v14 }
  0x97   :  { %p426_p4 = pnand %p425_p3, %p419_p0 }
  0x98   :  { %v497_v20 = vsub.f32 %v360_v4, %v52_v17  ;;  %63 = vadd.xlane.f32.xlu0 %v59_v18  ;;  %v499_v21 = vsub.f32 %v364_v5, %v54_v19 }
  0x9a   :  { %v60_v23 = vmul.f32 %v497_v20, %v497_v20  ;;  %v62_v24 = vmul.f32 %v499_v21, %v499_v21 }
  0x9c   :  { %67 = vadd.xlane.f32.xlu0 %v61_v22  ;;  %65 = vadd.xlane.f32.xlu1 %v60_v23 }
  0xa0   :  { %69 = vadd.xlane.f32.xlu1 %v62_v24 }
 0x125   :  { %v64_v39 = vpop.xlane.xlu0 %63 }
 0x126   :  { %v71_v40 = vmul.f32 0.0078125, %v64_v39 }
 0x128   :  { %v75_v41 = vadd.f32 1e-05, %v71_v40 }
 0x129   :  { %v66_v42 = vpop.xlane.xlu1 %65  ;;  %v68_v43 = vpop.xlane.xlu0 %67 }
 0x12a   :  { %410 = vrsqrt.f32 %v75_v41  ;;  %v72_v44 = vmul.f32 0.0078125, %v66_v42  ;;  %v73_v45 = vmul.f32 0.0078125, %v68_v43 }
 0x12c   :  { %v76_v46 = vadd.f32 1e-05, %v72_v44  ;;  %v77_v47 = vadd.f32 1e-05, %v73_v45 }
 0x12d   :  { %v70_v48 = vpop.xlane.xlu1 %69 }
 0x12e   :  { %412 = vrsqrt.f32 %v76_v46  ;;  %v74_v49 = vmul.f32 0.0078125, %v70_v48 }
 0x12f   :  { %414 = vrsqrt.f32 %v77_v47 }
 0x130   :  { %v78_v50 = vadd.f32 1e-05, %v74_v49 }
 0x132   :  { %416 = vrsqrt.f32 %v78_v50 }
 0x134   :  { %v411_v51 = vpop.eup %410 }
 0x135   :  { %v83_v52 = vmul.f32 %v411_v51, %v491_v13  ;;  %v304_v13 = vrot.slane %v295_v10, %v303_v11 }
 0x137   :  { %v94_v57 = vmul.f32 %v339_v53, %v83_v52 }
 0x138   :  { %v413_v54 = vpop.eup %412 }
 0x139   :  { %v415_v55 = vpop.eup %414  ;;  %v84_v56 = vmul.f32 %v413_v54, %v497_v20  ;;  %v105_v62 = vadd.f32 %v340_v58, %v94_v57 }
 0x13a   :  { %v85_v59 = vmul.f32 %v415_v55, %v493_v14 }
 0x13b   :  { %v95_v60 = vmul.f32 %v339_v53, %v84_v56 }
 0x13c   :  { %v417_v61 = vpop.eup %416  ;;  %v96_v1 = vmul.f32 %v339_v53, %v85_v59 }
 0x13d   :  { %v106_v63 = vadd.f32 %v340_v58, %v95_v60  ;;  %v86_v0 = vmul.f32 %v417_v61, %v499_v21 }
 0x13e   :  { %v107_v4 = vadd.f32 %v340_v58, %v96_v1 }
 0x13f   :  { %v117_v2 = vpack.c.bf16 %v106_v63, %v105_v62  ;;  %v97_v3 = vmul.f32 %v339_v53, %v86_v0 }
 0x141   :  { %248 = vmatmul.mubr.bf16.vlgmr.msra.gmra.mrb[0].mxu0 %v117_v2  ;;  %v108_v5 = vadd.f32 %v340_v58, %v97_v3 }
 0x143   :  { %v118_v6 = vpack.c.bf16 %v108_v5, %v107_v4 }
 0x145   :  { %258 = vmatmul.mubr.bf16.vlgmr.msra.gmra.mrb[0].mxu1 %v118_v6 }
 0x214   :  { %v249_v14 = vpop.f32.mrb[0].mxu0 }
 0x215   :  { %v307_v15 = vadd.f32 %v300_v12, %v249_v14  ;;  %v251_v16 = vpop.f32.mrb[1].mxu0 }
 0x216   :  { %v308_v17 = vadd.f32 %v304_v13, %v251_v16  ;;  %v253_v18 = vpop.f32.mrb[2].mxu0 }
 0x217   :  { %315 = vst [vmem:[#allocation3] sm:$0xff] %v307_v15  ;;  %v309_v19 = vadd.f32 %v300_v12, %v253_v18  ;;  %v255_v20 = vpop.f32.mrb[3].mxu0 }
 0x218   :  { %316 = vst [vmem:[#allocation3 + $0x8] sm:$0xff] %v308_v17  ;;  %v310_v21 = vadd.f32 %v304_v13, %v255_v20  ;;  %v259_v22 = vpop.f32.mrb[0].mxu1 }
 0x219   :  { %317 = vst [vmem:[#allocation3 + $0x10] sm:$0xff] %v309_v19  ;;  %v311_v23 = vadd.f32 %v300_v12, %v259_v22  ;;  %v261_v24 = vpop.f32.mrb[1].mxu1 }
 0x21a   :  { %318 = vst [vmem:[#allocation3 + $0x18] sm:$0xff] %v310_v21  ;;  %v312_v25 = vadd.f32 %v304_v13, %v261_v24  ;;  %v263_v26 = vpop.f32.mrb[2].mxu1 }
 0x21b   :  { %319 = vst [vmem:[#allocation3 + $0x20] sm:$0xff] %v311_v23  ;;  %v313_v27 = vadd.f32 %v300_v12, %v263_v26  ;;  %v265_v28 = vpop.f32.mrb[3].mxu1 }
 0x21c   :  { %320 = vst [vmem:[#allocation3 + $0x28] sm:$0xff] %v312_v25  ;;  %v314_v29 = vadd.f32 %v304_v13, %v265_v28 }
 0x21d   :  { %321 = vst [vmem:[#allocation3 + $0x30] sm:$0xff] %v313_v27 }
 0x21e   :  { %322 = vst [vmem:[#allocation3 + $0x38] sm:$0xff] %v314_v29 }
 0x21f   :  { %429 = shalt.err (!%p426_p4)
}
 0x220   :  { %s430_s9 = scalar_lea.hbm %s576_s5, 1024 }
 0x221   :  { %p431_p5 = scmp.ne.s32.totalorder %s576_s5, %s430_s9  ;;  %p434_p6 = scmp.lt.u32.totalorder %s430_s9, %s576_s5 }
 0x223   :  { %p436_p7 = pnand %p434_p6, %p431_p5 }
 0x225   :  { %439 = shalt.err (!%p436_p7)
}
 0x226   :  { %s444_s14 = smov 256   ;;  %s445_s15 = smov 16  }
 0x227   :  { %334 = dma.vmem_to_hbm [thread:$0]  %s329_s6, 1024, %s576_s5, [#allocation4], %s444_s14, %s444_s14, %s445_s15  }
 0x228   :  { %440 = dma.done.wait [#allocation4], 1024  }
 0x229   :  { %441 = vsyncadd [#allocation4], 4294966272 }
 0x22a   :  { %338 = vsyncpa [#allocation4], 1 }

</bundles_post_ra>
